<compile_context>
chip_gen: v7x
topology: tpu7x:2x2x1
jax: 0.10.0
libtpu: 0.0.40
codegen_flags: <defaults>
</compile_context>

<pallas_src>
import functools

import jax
import jax.numpy as jnp
from jax.experimental import pallas as pl
from jax.experimental.pallas import tpu as pltpu

EPS = 1e-5  # torch.nn.BatchNorm1d default eps


def _vmem_budget_bytes():
    """Per-kernel VMEM budget: ~3/4 of physical capacity, capped at 96 MiB.

    v7x: 64 MiB/TC -> 48 MiB budget; v5e/v6e: 128 MiB -> 96 MiB budget.
    Falls back to a conservative 48 MiB if the query is unavailable.
    """
    cap = 64 * 1024 * 1024
    try:
        info = pltpu.get_tpu_info()
        cap = int(getattr(info, "vmem_capacity_bytes", cap))
    except Exception:
        pass
    return max(32 * 1024 * 1024, min((cap * 3) // 4, 96 * 1024 * 1024))


# ---------------------------------------------------------------------------
# Kernel 1: fused Linear(no bias) -> BatchNorm1d(batch stats) [-> ReLU]
#   mode == "hidden": BN with affine (gamma/beta) + ReLU   (projector hidden layers)
#   mode == "final" : affine-free BN, no ReLU              (last Linear + self.bn fused)
# Grid: (j over Dout tiles ["parallel"], k over Din tiles ["arbitrary", reduction last]).
# ---------------------------------------------------------------------------
def _linear_bn_relu_kernel(x_ref, w_ref, g_ref, b_ref, o_ref, acc_ref, *, mode):
    k = pl.program_id(1)

    @pl.when(k == 0)
    def _():
        acc_ref[...] = jnp.zeros_like(acc_ref)

    # bf16 MXU operands, f32 accumulation.
    acc_ref[...] += jnp.dot(
        x_ref[...].astype(jnp.bfloat16),
        w_ref[...].astype(jnp.bfloat16),
        preferred_element_type=jnp.float32,
    )

    @pl.when(k == pl.num_programs(1) - 1)
    def _():
        y = acc_ref[...]
        # Single-pass BatchNorm1d training-mode batch stats (biased variance).
        inv_b = 1.0 / y.shape[0]
        mean = jnp.sum(y, axis=0, keepdims=True) * inv_b
        ex2 = jnp.sum(y * y, axis=0, keepdims=True) * inv_b
        var = jnp.maximum(ex2 - mean * mean, 0.0)
        yn = (y - mean) * jax.lax.rsqrt(var + EPS)
        if mode == "hidden":
            yn = jnp.maximum(yn * g_ref[...] + b_ref[...], 0.0)
        o_ref[...] = yn.astype(o_ref.dtype)


def _pick_projector_tiles(B, d_in, d_out, x_itemsize, w_itemsize, budget,
                          tn_max, tk_max):
    tn = min(tn_max, d_out)
    tk = min(tk_max, d_in)

    def footprint(tn_, tk_):
        return (2 * B * tk_ * x_itemsize       # x block, double-buffered
                + 2 * tk_ * tn_ * w_itemsize   # w block, double-buffered
                + 2 * B * tn_ * 2              # bf16 out block, double-buffered
                + B * tn_ * 4                  # f32 accumulator scratch
                + 2 * 2 * tn_ * 4 * 2)         # gamma/beta blocks

    # Shrink tk first (only adds k steps), then tn, until the tiles fit VMEM.
    while footprint(tn, tk) > budget and tk > 256 and d_in % (tk // 2) == 0:
        tk //= 2
    while footprint(tn, tk) > budget and tn > 256 and d_out % (tn // 2) == 0:
        tn //= 2
    return tn, tk


def linear_bn_relu(x, w, gamma, beta, *, mode, tn_max=1024, tk_max=2048):
    B, d_in = x.shape
    d_out = w.shape[1]
    assert B % 8 == 0

    budget = _vmem_budget_bytes()
    tn, tk = _pick_projector_tiles(
        B, d_in, d_out, x.dtype.itemsize, w.dtype.itemsize, budget, tn_max, tk_max
    )
    assert d_out % tn == 0 and d_in % tk == 0

    kern = functools.partial(_linear_bn_relu_kernel, mode=mode)
    bytes_accessed = (B * d_in * x.dtype.itemsize * (d_out // tn)
                      + d_in * d_out * w.dtype.itemsize
                      + B * d_out * 2 + 2 * 4 * d_out)
    return pl.pallas_call(
        kern,
        out_shape=jax.ShapeDtypeStruct((B, d_out), jnp.bfloat16),
        grid_spec=pltpu.PrefetchScalarGridSpec(
            num_scalar_prefetch=0,
            grid=(d_out // tn, d_in // tk),
            in_specs=[
                pl.BlockSpec((B, tk), lambda j, k: (0, k)),
                pl.BlockSpec((tk, tn), lambda j, k: (k, j)),
                pl.BlockSpec((1, tn), lambda j, k: (0, j)),
                pl.BlockSpec((1, tn), lambda j, k: (0, j)),
            ],
            out_specs=pl.BlockSpec((B, tn), lambda j, k: (0, j)),
            scratch_shapes=[pltpu.VMEM((B, tn), jnp.float32)],
        ),
        compiler_params=pltpu.CompilerParams(
            dimension_semantics=("parallel", "arbitrary"),
            vmem_limit_bytes=budget,
        ),
        cost_estimate=pl.CostEstimate(
            flops=2 * B * d_in * d_out,
            transcendentals=d_out,
            bytes_accessed=bytes_accessed,
        ),
    )(x, w, gamma, beta)


# ---------------------------------------------------------------------------
# Kernel 2: tiled Barlow Twins loss.  c = (z1n.T @ z2n) / batch_size is computed
# tile-by-tile (never materialized); both z1 and z2 arrive as (B, F) and the
# batch contraction is done in-kernel with lax.dot_general (no host transpose).
# Grid axis i is "parallel" (per-i partial sums in SMEM, summed in JAX), so the
# loss can use both TensorCores on v7x.  Diagonal work only on diagonal tiles.
# ---------------------------------------------------------------------------
def _barlow_loss_kernel(z1_ref, z2_ref, loss_ref, *, inv_bs, lambd):
    i = pl.program_id(0)
    j = pl.program_id(1)

    @pl.when(j == 0)
    def _():
        loss_ref[0, 0] = 0.0

    # Contract over the batch dim (dim 0 of both operands): [t_i, t_j] tile of c*bs.
    c_raw = jax.lax.dot_general(
        z1_ref[...], z2_ref[...],
        dimension_numbers=(((0,), (0,)), ((), ())),
        preferred_element_type=jnp.float32,
    )
    # TODO(synk): torch.distributed.all_reduce(c) -- single-device run, no-op here.

    # Off-diag contribution for every entry of this tile (diag corrected below);
    # scaled once instead of scaling the whole tile.
    loss_ref[0, 0] += (lambd * inv_bs * inv_bs) * jnp.sum(c_raw * c_raw)

    @pl.when(i == j)                    # only diagonal tiles carry diagonal elements
    def _():
        c = c_raw * inv_bs
        row = jax.lax.broadcasted_iota(jnp.int32, c.shape, 0)
        col = jax.lax.broadcasted_iota(jnp.int32, c.shape, 1)
        dm = row == col
        diag_sq = jnp.sum(jnp.where(dm, c * c, 0.0))
        on_diag = jnp.sum(jnp.where(dm, (c - 1.0) ** 2, 0.0))
        loss_ref[0, 0] += on_diag - lambd * diag_sq


def barlow_loss(z1, z2, batch_size, lambd, *, tile=1024):
    B, F = z1.shape
    t = min(tile, F)
    assert F % t == 0
    nt = F // t

    kern = functools.partial(
        _barlow_loss_kernel, inv_bs=1.0 / float(batch_size), lambd=float(lambd)
    )
    partials = pl.pallas_call(
        kern,
        out_shape=jax.ShapeDtypeStruct((nt, 1), jnp.float32),
        grid_spec=pltpu.PrefetchScalarGridSpec(
            num_scalar_prefetch=0,
            grid=(nt, nt),
            in_specs=[
                pl.BlockSpec((B, t), lambda i, j: (0, i)),
                pl.BlockSpec((B, t), lambda i, j: (0, j)),
            ],
            out_specs=pl.BlockSpec(
                (1, 1), lambda i, j: (i, 0), memory_space=pltpu.MemorySpace.SMEM
            ),
        ),
        compiler_params=pltpu.CompilerParams(
            dimension_semantics=("parallel", "arbitrary"),
            vmem_limit_bytes=_vmem_budget_bytes(),
        ),
        cost_estimate=pl.CostEstimate(
            flops=2 * B * F * F,
            transcendentals=0,
            bytes_accessed=(nt + 1) * B * F * z1.dtype.itemsize + nt * 4,
        ),
    )(z1, z2)
    return jnp.sum(partials)


# ---------------------------------------------------------------------------
# BarlowTwins forward: projector(y1), projector(y2), Barlow loss.
# The trailing affine-free BatchNorm1d (self.bn) is fused into the final
# projector layer's finalize, so z1/z2 leave the projector already normalized.
# ---------------------------------------------------------------------------
def barlow_twins_forward(y1, y2, proj_params, batch_size, lambd):
    def projector(x):
        x = x.astype(jnp.bfloat16)
        n = len(proj_params)
        for idx, (w, g, b) in enumerate(proj_params):
            mode = "hidden" if idx < n - 1 else "final"
            x = linear_bn_relu(x, w, g, b, mode=mode)   # weights fed as stored (bf16)
        return x

    z1 = projector(y1)
    z2 = projector(y2)
    return barlow_loss(z1, z2, batch_size, lambd)


# ---------------------------------------------------------------------------
# Pure-JAX reference mirroring the kernel math (bf16 MXU operands, f32 stats,
# single-pass BN variance).
# ---------------------------------------------------------------------------
def _reference(y1, y2, proj_params, batch_size, lambd):
    def mm(a, b):
        return jnp.dot(a.astype(jnp.bfloat16), b.astype(jnp.bfloat16),
                       preferred_element_type=jnp.float32)

    def bn(y):
        m = jnp.mean(y, axis=0, keepdims=True)
        ex2 = jnp.mean(y * y, axis=0, keepdims=True)
        v = jnp.maximum(ex2 - m * m, 0.0)
        return (y - m) * jax.lax.rsqrt(v + EPS)

    def projector(x):
        n = len(proj_params)
        for i, (w, g, b) in enumerate(proj_params):
            y = mm(x, w)
            if i < n - 1:
                y = jnp.maximum(bn(y) * g + b, 0.0)
            else:
                y = bn(y)  # trailing affine-free BatchNorm1d fused here
            x = y.astype(jnp.bfloat16)
        return x

    z1 = projector(y1)
    z2 = projector(y2)
    c = mm(z1.T, z2) / batch_size
    on_diag = jnp.sum((jnp.diag(c) - 1.0) ** 2)
    off_diag = jnp.sum(c * c) - jnp.sum(jnp.diag(c) ** 2)
    return on_diag + lambd * off_diag


if __name__ == "__main__":
    # Small-shape config (real model: feat=1024, projector "8192-8192-8192", bs=2048).
    # Note: B=16 keeps the MXU nearly idle; perf conclusions need real shapes.
    B = 16
    FEAT = 128
    SIZES = [FEAT, 256, 256, 128]
    LAMBD = 0.0051

    key = jax.random.PRNGKey(0)
    k_y1, k_y2, k_w = jax.random.split(key, 3)
    y1 = jax.random.normal(k_y1, (B, FEAT), dtype=jnp.float32)
    y2 = jax.random.normal(k_y2, (B, FEAT), dtype=jnp.float32)

    # Linear weights stored as [in, out] in bf16 (no wrapper-side cast needed);
    # BatchNorm gamma=1 / beta=0 in f32.
    proj_params = []
    wkeys = jax.random.split(k_w, len(SIZES) - 1)
    for i in range(len(SIZES) - 1):
        d_in, d_out = SIZES[i], SIZES[i + 1]
        w = (jax.random.normal(wkeys[i], (d_in, d_out), dtype=jnp.float32)
             / jnp.sqrt(jnp.float32(d_in))).astype(jnp.bfloat16)
        gamma = jnp.ones((1, d_out), dtype=jnp.float32)
        beta = jnp.zeros((1, d_out), dtype=jnp.float32)
        proj_params.append((w, gamma, beta))

    fwd = jax.jit(
        lambda a, b, p: barlow_twins_forward(a, b, p, batch_size=B, lambd=LAMBD)
    )
    loss = jax.block_until_ready(fwd(y1, y2, proj_params))

    ref = _reference(y1, y2, proj_params, batch_size=B, lambd=LAMBD)
    assert jnp.isfinite(loss), "loss is not finite"
    assert jnp.allclose(loss, ref, rtol=2e-2, atol=1e-2), (loss, ref)

    print("KERNEL_OK")
</pallas_src>

<mosaic_0001>
module attributes {stable_mosaic.version = 11 : i64} {
  func.func @_linear_bn_relu_kernel(%arg0: i32, %arg1: i32, %arg2: memref<16x256xbf16, #tpu.memory_space<vmem>>, %arg3: memref<256x256xbf16, #tpu.memory_space<vmem>>, %arg4: memref<1x256xf32, #tpu.memory_space<vmem>>, %arg5: memref<1x256xf32, #tpu.memory_space<vmem>>, %arg6: memref<16x256xbf16, #tpu.memory_space<vmem>>, %arg7: memref<16x256xf32, #tpu.memory_space<vmem>>) attributes {dimension_semantics = [#tpu.dimension_semantics<parallel>, #tpu.dimension_semantics<arbitrary>], iteration_bounds = array<i64: 1, 1>, scalar_prefetch = 0 : i64, scratch_operands = 1 : i64, tpu.core_type = #tpu.core_type<tc>, window_params = [{transform_indices = @transform_0, window_bounds = array<i64: 16, 256>}, {transform_indices = @transform_1, window_bounds = array<i64: 256, 256>}, {transform_indices = @transform_2, window_bounds = array<i64: 1, 256>}, {transform_indices = @transform_3, window_bounds = array<i64: 1, 256>}, {transform_indices = @transform_4, window_bounds = array<i64: 16, 256>}]} {
    %c0_i32 = arith.constant 0 : i32
    %0 = arith.cmpi eq, %arg1, %c0_i32 : i32
    %1 = arith.extui %0 : i1 to i32
    %c0_i32_0 = arith.constant 0 : i32
    %2 = arith.cmpi ne, %1, %c0_i32_0 : i32
    scf.if %2 {
      %cst_10 = arith.constant 0.000000e+00 : f32
      %12 = vector.broadcast %cst_10 : f32 to vector<16x256xf32>
      %c0_11 = arith.constant 0 : index
      %c0_12 = arith.constant 0 : index
      %13 = vector.load %arg7[%c0_11, %c0_12] : memref<16x256xf32, #tpu.memory_space<vmem>>, vector<16x256xf32>
      tpu.vector_store %arg7[%c0_11, %c0_12], %12 {strides = array<i32>} : memref<16x256xf32, #tpu.memory_space<vmem>>, vector<16x256xf32>,
    } else {
    }
    %c0 = arith.constant 0 : index
    %c0_1 = arith.constant 0 : index
    %3 = vector.load %arg7[%c0, %c0_1] : memref<16x256xf32, #tpu.memory_space<vmem>>, vector<16x256xf32>
    %c0_2 = arith.constant 0 : index
    %c0_3 = arith.constant 0 : index
    %4 = vector.load %arg2[%c0_2, %c0_3] : memref<16x256xbf16, #tpu.memory_space<vmem>>, vector<16x256xbf16>
    %c0_4 = arith.constant 0 : index
    %c0_5 = arith.constant 0 : index
    %5 = vector.load %arg3[%c0_4, %c0_5] : memref<256x256xbf16, #tpu.memory_space<vmem>>, vector<256x256xbf16>
    %cst = arith.constant dense<0.000000e+00> : vector<16x256xf32>
    %6 = tpu.matmul %4, %5, %cst {dimension_numbers = #tpu.dot_dimension_numbers<[1], [0], [0], [1], [0, 0, 1, 1], [], []>} : vector<16x256xbf16>, vector<256x256xbf16>, vector<16x256xf32> -> vector<16x256xf32>
    %7 = arith.addf %3, %6 : vector<16x256xf32>
    %c0_6 = arith.constant 0 : index
    %c0_7 = arith.constant 0 : index
    %8 = vector.load %arg7[%c0_6, %c0_7] : memref<16x256xf32, #tpu.memory_space<vmem>>, vector<16x256xf32>
    tpu.vector_store %arg7[%c0_6, %c0_7], %7 {strides = array<i32>} : memref<16x256xf32, #tpu.memory_space<vmem>>, vector<16x256xf32>,
    %c0_i32_8 = arith.constant 0 : i32
    %9 = arith.cmpi eq, %arg1, %c0_i32_8 : i32
    %10 = arith.extui %9 : i1 to i32
    %c0_i32_9 = arith.constant 0 : i32
    %11 = arith.cmpi ne, %10, %c0_i32_9 : i32
    scf.if %11 {
      %c0_10 = arith.constant 0 : index
      %c0_11 = arith.constant 0 : index
      %12 = vector.load %arg7[%c0_10, %c0_11] : memref<16x256xf32, #tpu.memory_space<vmem>>, vector<16x256xf32>
      %cst_12 = arith.constant dense<0.000000e+00> : vector<256xf32>
      %13 = vector.multi_reduction <add>, %12, %cst_12 [0] : vector<16x256xf32> to vector<256xf32>
      %14 = vector.shape_cast %13 : vector<256xf32> to vector<1x256xf32>
      %cst_13 = arith.constant 6.250000e-02 : f32
      %15 = vector.broadcast %cst_13 : f32 to vector<1x256xf32>
      %16 = arith.mulf %14, %15 : vector<1x256xf32>
      %17 = arith.mulf %12, %12 : vector<16x256xf32>
      %cst_14 = arith.constant dense<0.000000e+00> : vector<256xf32>
      %18 = vector.multi_reduction <add>, %17, %cst_14 [0] : vector<16x256xf32> to vector<256xf32>
      %19 = vector.shape_cast %18 : vector<256xf32> to vector<1x256xf32>
      %cst_15 = arith.constant 6.250000e-02 : f32
      %20 = vector.broadcast %cst_15 : f32 to vector<1x256xf32>
      %21 = arith.mulf %19, %20 : vector<1x256xf32>
      %22 = arith.mulf %16, %16 : vector<1x256xf32>
      %23 = arith.subf %21, %22 : vector<1x256xf32>
      %cst_16 = arith.constant 0.000000e+00 : f32
      %24 = vector.broadcast %cst_16 : f32 to vector<1x256xf32>
      %25 = arith.maximumf %23, %24 : vector<1x256xf32>
      %26 = vector.broadcast %16 : vector<1x256xf32> to vector<16x256xf32>
      %27 = arith.subf %12, %26 : vector<16x256xf32>
      %cst_17 = arith.constant 9.99999974E-6 : f32
      %28 = vector.broadcast %cst_17 : f32 to vector<1x256xf32>
      %29 = arith.addf %25, %28 : vector<1x256xf32>
      %30 = math.rsqrt %29 : vector<1x256xf32>
      %31 = vector.broadcast %30 : vector<1x256xf32> to vector<16x256xf32>
      %32 = arith.mulf %27, %31 : vector<16x256xf32>
      %c0_18 = arith.constant 0 : index
      %c0_19 = arith.constant 0 : index
      %33 = vector.load %arg4[%c0_18, %c0_19] : memref<1x256xf32, #tpu.memory_space<vmem>>, vector<1x256xf32>
      %34 = vector.broadcast %33 : vector<1x256xf32> to vector<16x256xf32>
      %35 = arith.mulf %32, %34 : vector<16x256xf32>
      %c0_20 = arith.constant 0 : index
      %c0_21 = arith.constant 0 : index
      %36 = vector.load %arg5[%c0_20, %c0_21] : memref<1x256xf32, #tpu.memory_space<vmem>>, vector<1x256xf32>
      %37 = vector.broadcast %36 : vector<1x256xf32> to vector<16x256xf32>
      %38 = arith.addf %35, %37 : vector<16x256xf32>
      %cst_22 = arith.constant 0.000000e+00 : f32
      %39 = vector.broadcast %cst_22 : f32 to vector<16x256xf32>
      %40 = arith.maximumf %38, %39 : vector<16x256xf32>
      %41 = arith.truncf %40 : vector<16x256xf32> to vector<16x256xbf16>
      %c0_23 = arith.constant 0 : index
      %c0_24 = arith.constant 0 : index
      %42 = vector.load %arg6[%c0_23, %c0_24] : memref<16x256xbf16, #tpu.memory_space<vmem>>, vector<16x256xbf16>
      tpu.vector_store %arg6[%c0_23, %c0_24], %41 {strides = array<i32>} : memref<16x256xbf16, #tpu.memory_space<vmem>>, vector<16x256xbf16>,
    } else {
    }
    return
  }
  func.func @transform_0(%arg0: i32, %arg1: i32) -> (i32, i32) {
    %c0_i32 = arith.constant 0 : i32
    %c0_i32_0 = arith.constant 0 : i32
    return %c0_i32, %arg1 : i32, i32
  }
  func.func @transform_1(%arg0: i32, %arg1: i32) -> (i32, i32) {
    %c0_i32 = arith.constant 0 : i32
    return %arg1, %arg0 : i32, i32
  }
  func.func @transform_2(%arg0: i32, %arg1: i32) -> (i32, i32) {
    %c0_i32 = arith.constant 0 : i32
    %c0_i32_0 = arith.constant 0 : i32
    return %c0_i32, %arg0 : i32, i32
  }
  func.func @transform_3(%arg0: i32, %arg1: i32) -> (i32, i32) {
    %c0_i32 = arith.constant 0 : i32
    %c0_i32_0 = arith.constant 0 : i32
    return %c0_i32, %arg0 : i32, i32
  }
  func.func @transform_4(%arg0: i32, %arg1: i32) -> (i32, i32) {
    %c0_i32 = arith.constant 0 : i32
    %c0_i32_0 = arith.constant 0 : i32
    return %c0_i32, %arg0 : i32, i32
  }
}

module attributes {stable_mosaic.version = 11 : i64} {
  func.func @_linear_bn_relu_kernel(%arg0: i32, %arg1: i32, %arg2: memref<16x128xbf16, #tpu.memory_space<vmem>>, %arg3: memref<128x256xbf16, #tpu.memory_space<vmem>>, %arg4: memref<1x256xf32, #tpu.memory_space<vmem>>, %arg5: memref<1x256xf32, #tpu.memory_space<vmem>>, %arg6: memref<16x256xbf16, #tpu.memory_space<vmem>>, %arg7: memref<16x256xf32, #tpu.memory_space<vmem>>) attributes {dimension_semantics = [#tpu.dimension_semantics<parallel>, #tpu.dimension_semantics<arbitrary>], iteration_bounds = array<i64: 1, 1>, scalar_prefetch = 0 : i64, scratch_operands = 1 : i64, tpu.core_type = #tpu.core_type<tc>, window_params = [{transform_indices = @transform_0, window_bounds = array<i64: 16, 128>}, {transform_indices = @transform_1, window_bounds = array<i64: 128, 256>}, {transform_indices = @transform_2, window_bounds = array<i64: 1, 256>}, {transform_indices = @transform_3, window_bounds = array<i64: 1, 256>}, {transform_indices = @transform_4, window_bounds = array<i64: 16, 256>}]} {
    %c0_i32 = arith.constant 0 : i32
    %0 = arith.cmpi eq, %arg1, %c0_i32 : i32
    %1 = arith.extui %0 : i1 to i32
    %c0_i32_0 = arith.constant 0 : i32
    %2 = arith.cmpi ne, %1, %c0_i32_0 : i32
    scf.if %2 {
      %cst_10 = arith.constant 0.000000e+00 : f32
      %12 = vector.broadcast %cst_10 : f32 to vector<16x256xf32>
      %c0_11 = arith.constant 0 : index
      %c0_12 = arith.constant 0 : index
      %13 = vector.load %arg7[%c0_11, %c0_12] : memref<16x256xf32, #tpu.memory_space<vmem>>, vector<16x256xf32>
      tpu.vector_store %arg7[%c0_11, %c0_12], %12 {strides = array<i32>} : memref<16x256xf32, #tpu.memory_space<vmem>>, vector<16x256xf32>,
    } else {
    }
    %c0 = arith.constant 0 : index
    %c0_1 = arith.constant 0 : index
    %3 = vector.load %arg7[%c0, %c0_1] : memref<16x256xf32, #tpu.memory_space<vmem>>, vector<16x256xf32>
    %c0_2 = arith.constant 0 : index
    %c0_3 = arith.constant 0 : index
    %4 = vector.load %arg2[%c0_2, %c0_3] : memref<16x128xbf16, #tpu.memory_space<vmem>>, vector<16x128xbf16>
    %c0_4 = arith.constant 0 : index
    %c0_5 = arith.constant 0 : index
    %5 = vector.load %arg3[%c0_4, %c0_5] : memref<128x256xbf16, #tpu.memory_space<vmem>>, vector<128x256xbf16>
    %cst = arith.constant dense<0.000000e+00> : vector<16x256xf32>
    %6 = tpu.matmul %4, %5, %cst {dimension_numbers = #tpu.dot_dimension_numbers<[1], [0], [0], [1], [0, 0, 1, 1], [], []>} : vector<16x128xbf16>, vector<128x256xbf16>, vector<16x256xf32> -> vector<16x256xf32>
    %7 = arith.addf %3, %6 : vector<16x256xf32>
    %c0_6 = arith.constant 0 : index
    %c0_7 = arith.constant 0 : index
    %8 = vector.load %arg7[%c0_6, %c0_7] : memref<16x256xf32, #tpu.memory_space<vmem>>, vector<16x256xf32>
    tpu.vector_store %arg7[%c0_6, %c0_7], %7 {strides = array<i32>} : memref<16x256xf32, #tpu.memory_space<vmem>>, vector<16x256xf32>,
    %c0_i32_8 = arith.constant 0 : i32
    %9 = arith.cmpi eq, %arg1, %c0_i32_8 : i32
    %10 = arith.extui %9 : i1 to i32
    %c0_i32_9 = arith.constant 0 : i32
    %11 = arith.cmpi ne, %10, %c0_i32_9 : i32
    scf.if %11 {
      %c0_10 = arith.constant 0 : index
      %c0_11 = arith.constant 0 : index
      %12 = vector.load %arg7[%c0_10, %c0_11] : memref<16x256xf32, #tpu.memory_space<vmem>>, vector<16x256xf32>
      %cst_12 = arith.constant dense<0.000000e+00> : vector<256xf32>
      %13 = vector.multi_reduction <add>, %12, %cst_12 [0] : vector<16x256xf32> to vector<256xf32>
      %14 = vector.shape_cast %13 : vector<256xf32> to vector<1x256xf32>
      %cst_13 = arith.constant 6.250000e-02 : f32
      %15 = vector.broadcast %cst_13 : f32 to vector<1x256xf32>
      %16 = arith.mulf %14, %15 : vector<1x256xf32>
      %17 = arith.mulf %12, %12 : vector<16x256xf32>
      %cst_14 = arith.constant dense<0.000000e+00> : vector<256xf32>
      %18 = vector.multi_reduction <add>, %17, %cst_14 [0] : vector<16x256xf32> to vector<256xf32>
      %19 = vector.shape_cast %18 : vector<256xf32> to vector<1x256xf32>
      %cst_15 = arith.constant 6.250000e-02 : f32
      %20 = vector.broadcast %cst_15 : f32 to vector<1x256xf32>
      %21 = arith.mulf %19, %20 : vector<1x256xf32>
      %22 = arith.mulf %16, %16 : vector<1x256xf32>
      %23 = arith.subf %21, %22 : vector<1x256xf32>
      %cst_16 = arith.constant 0.000000e+00 : f32
      %24 = vector.broadcast %cst_16 : f32 to vector<1x256xf32>
      %25 = arith.maximumf %23, %24 : vector<1x256xf32>
      %26 = vector.broadcast %16 : vector<1x256xf32> to vector<16x256xf32>
      %27 = arith.subf %12, %26 : vector<16x256xf32>
      %cst_17 = arith.constant 9.99999974E-6 : f32
      %28 = vector.broadcast %cst_17 : f32 to vector<1x256xf32>
      %29 = arith.addf %25, %28 : vector<1x256xf32>
      %30 = math.rsqrt %29 : vector<1x256xf32>
      %31 = vector.broadcast %30 : vector<1x256xf32> to vector<16x256xf32>
      %32 = arith.mulf %27, %31 : vector<16x256xf32>
      %c0_18 = arith.constant 0 : index
      %c0_19 = arith.constant 0 : index
      %33 = vector.load %arg4[%c0_18, %c0_19] : memref<1x256xf32, #tpu.memory_space<vmem>>, vector<1x256xf32>
      %34 = vector.broadcast %33 : vector<1x256xf32> to vector<16x256xf32>
      %35 = arith.mulf %32, %34 : vector<16x256xf32>
      %c0_20 = arith.constant 0 : index
      %c0_21 = arith.constant 0 : index
      %36 = vector.load %arg5[%c0_20, %c0_21] : memref<1x256xf32, #tpu.memory_space<vmem>>, vector<1x256xf32>
      %37 = vector.broadcast %36 : vector<1x256xf32> to vector<16x256xf32>
      %38 = arith.addf %35, %37 : vector<16x256xf32>
      %cst_22 = arith.constant 0.000000e+00 : f32
      %39 = vector.broadcast %cst_22 : f32 to vector<16x256xf32>
      %40 = arith.maximumf %38, %39 : vector<16x256xf32>
      %41 = arith.truncf %40 : vector<16x256xf32> to vector<16x256xbf16>
      %c0_23 = arith.constant 0 : index
      %c0_24 = arith.constant 0 : index
      %42 = vector.load %arg6[%c0_23, %c0_24] : memref<16x256xbf16, #tpu.memory_space<vmem>>, vector<16x256xbf16>
      tpu.vector_store %arg6[%c0_23, %c0_24], %41 {strides = array<i32>} : memref<16x256xbf16, #tpu.memory_space<vmem>>, vector<16x256xbf16>,
    } else {
    }
    return
  }
  func.func @transform_0(%arg0: i32, %arg1: i32) -> (i32, i32) {
    %c0_i32 = arith.constant 0 : i32
    %c0_i32_0 = arith.constant 0 : i32
    return %c0_i32, %arg1 : i32, i32
  }
  func.func @transform_1(%arg0: i32, %arg1: i32) -> (i32, i32) {
    %c0_i32 = arith.constant 0 : i32
    return %arg1, %arg0 : i32, i32
  }
  func.func @transform_2(%arg0: i32, %arg1: i32) -> (i32, i32) {
    %c0_i32 = arith.constant 0 : i32
    %c0_i32_0 = arith.constant 0 : i32
    return %c0_i32, %arg0 : i32, i32
  }
  func.func @transform_3(%arg0: i32, %arg1: i32) -> (i32, i32) {
    %c0_i32 = arith.constant 0 : i32
    %c0_i32_0 = arith.constant 0 : i32
    return %c0_i32, %arg0 : i32, i32
  }
  func.func @transform_4(%arg0: i32, %arg1: i32) -> (i32, i32) {
    %c0_i32 = arith.constant 0 : i32
    %c0_i32_0 = arith.constant 0 : i32
    return %c0_i32, %arg0 : i32, i32
  }
}

module attributes {stable_mosaic.version = 11 : i64} {
  func.func @_linear_bn_relu_kernel(%arg0: i32, %arg1: i32, %arg2: memref<16x256xbf16, #tpu.memory_space<vmem>>, %arg3: memref<256x128xbf16, #tpu.memory_space<vmem>>, %arg4: memref<1x128xf32, #tpu.memory_space<vmem>>, %arg5: memref<1x128xf32, #tpu.memory_space<vmem>>, %arg6: memref<16x128xbf16, #tpu.memory_space<vmem>>, %arg7: memref<16x128xf32, #tpu.memory_space<vmem>>) attributes {dimension_semantics = [#tpu.dimension_semantics<parallel>, #tpu.dimension_semantics<arbitrary>], iteration_bounds = array<i64: 1, 1>, scalar_prefetch = 0 : i64, scratch_operands = 1 : i64, tpu.core_type = #tpu.core_type<tc>, window_params = [{transform_indices = @transform_0, window_bounds = array<i64: 16, 256>}, {transform_indices = @transform_1, window_bounds = array<i64: 256, 128>}, {transform_indices = @transform_2, window_bounds = array<i64: 1, 128>}, {transform_indices = @transform_3, window_bounds = array<i64: 1, 128>}, {transform_indices = @transform_4, window_bounds = array<i64: 16, 128>}]} {
    %c0_i32 = arith.constant 0 : i32
    %0 = arith.cmpi eq, %arg1, %c0_i32 : i32
    %1 = arith.extui %0 : i1 to i32
    %c0_i32_0 = arith.constant 0 : i32
    %2 = arith.cmpi ne, %1, %c0_i32_0 : i32
    scf.if %2 {
      %cst_10 = arith.constant 0.000000e+00 : f32
      %12 = vector.broadcast %cst_10 : f32 to vector<16x128xf32>
      %c0_11 = arith.constant 0 : index
      %c0_12 = arith.constant 0 : index
      %13 = vector.load %arg7[%c0_11, %c0_12] : memref<16x128xf32, #tpu.memory_space<vmem>>, vector<16x128xf32>
      tpu.vector_store %arg7[%c0_11, %c0_12], %12 {strides = array<i32>} : memref<16x128xf32, #tpu.memory_space<vmem>>, vector<16x128xf32>,
    } else {
    }
    %c0 = arith.constant 0 : index
    %c0_1 = arith.constant 0 : index
    %3 = vector.load %arg7[%c0, %c0_1] : memref<16x128xf32, #tpu.memory_space<vmem>>, vector<16x128xf32>
    %c0_2 = arith.constant 0 : index
    %c0_3 = arith.constant 0 : index
    %4 = vector.load %arg2[%c0_2, %c0_3] : memref<16x256xbf16, #tpu.memory_space<vmem>>, vector<16x256xbf16>
    %c0_4 = arith.constant 0 : index
    %c0_5 = arith.constant 0 : index
    %5 = vector.load %arg3[%c0_4, %c0_5] : memref<256x128xbf16, #tpu.memory_space<vmem>>, vector<256x128xbf16>
    %cst = arith.constant dense<0.000000e+00> : vector<16x128xf32>
    %6 = tpu.matmul %4, %5, %cst {dimension_numbers = #tpu.dot_dimension_numbers<[1], [0], [0], [1], [0, 0, 1, 1], [], []>} : vector<16x256xbf16>, vector<256x128xbf16>, vector<16x128xf32> -> vector<16x128xf32>
    %7 = arith.addf %3, %6 : vector<16x128xf32>
    %c0_6 = arith.constant 0 : index
    %c0_7 = arith.constant 0 : index
    %8 = vector.load %arg7[%c0_6, %c0_7] : memref<16x128xf32, #tpu.memory_space<vmem>>, vector<16x128xf32>
    tpu.vector_store %arg7[%c0_6, %c0_7], %7 {strides = array<i32>} : memref<16x128xf32, #tpu.memory_space<vmem>>, vector<16x128xf32>,
    %c0_i32_8 = arith.constant 0 : i32
    %9 = arith.cmpi eq, %arg1, %c0_i32_8 : i32
    %10 = arith.extui %9 : i1 to i32
    %c0_i32_9 = arith.constant 0 : i32
    %11 = arith.cmpi ne, %10, %c0_i32_9 : i32
    scf.if %11 {
      %c0_10 = arith.constant 0 : index
      %c0_11 = arith.constant 0 : index
      %12 = vector.load %arg7[%c0_10, %c0_11] : memref<16x128xf32, #tpu.memory_space<vmem>>, vector<16x128xf32>
      %cst_12 = arith.constant dense<0.000000e+00> : vector<128xf32>
      %13 = vector.multi_reduction <add>, %12, %cst_12 [0] : vector<16x128xf32> to vector<128xf32>
      %14 = vector.shape_cast %13 : vector<128xf32> to vector<1x128xf32>
      %cst_13 = arith.constant 6.250000e-02 : f32
      %15 = vector.broadcast %cst_13 : f32 to vector<1x128xf32>
      %16 = arith.mulf %14, %15 : vector<1x128xf32>
      %17 = arith.mulf %12, %12 : vector<16x128xf32>
      %cst_14 = arith.constant dense<0.000000e+00> : vector<128xf32>
      %18 = vector.multi_reduction <add>, %17, %cst_14 [0] : vector<16x128xf32> to vector<128xf32>
      %19 = vector.shape_cast %18 : vector<128xf32> to vector<1x128xf32>
      %cst_15 = arith.constant 6.250000e-02 : f32
      %20 = vector.broadcast %cst_15 : f32 to vector<1x128xf32>
      %21 = arith.mulf %19, %20 : vector<1x128xf32>
      %22 = arith.mulf %16, %16 : vector<1x128xf32>
      %23 = arith.subf %21, %22 : vector<1x128xf32>
      %cst_16 = arith.constant 0.000000e+00 : f32
      %24 = vector.broadcast %cst_16 : f32 to vector<1x128xf32>
      %25 = arith.maximumf %23, %24 : vector<1x128xf32>
      %26 = vector.broadcast %16 : vector<1x128xf32> to vector<16x128xf32>
      %27 = arith.subf %12, %26 : vector<16x128xf32>
      %cst_17 = arith.constant 9.99999974E-6 : f32
      %28 = vector.broadcast %cst_17 : f32 to vector<1x128xf32>
      %29 = arith.addf %25, %28 : vector<1x128xf32>
      %30 = math.rsqrt %29 : vector<1x128xf32>
      %31 = vector.broadcast %30 : vector<1x128xf32> to vector<16x128xf32>
      %32 = arith.mulf %27, %31 : vector<16x128xf32>
      %33 = arith.truncf %32 : vector<16x128xf32> to vector<16x128xbf16>
      %c0_18 = arith.constant 0 : index
      %c0_19 = arith.constant 0 : index
      %34 = vector.load %arg6[%c0_18, %c0_19] : memref<16x128xbf16, #tpu.memory_space<vmem>>, vector<16x128xbf16>
      tpu.vector_store %arg6[%c0_18, %c0_19], %33 {strides = array<i32>} : memref<16x128xbf16, #tpu.memory_space<vmem>>, vector<16x128xbf16>,
    } else {
    }
    return
  }
  func.func @transform_0(%arg0: i32, %arg1: i32) -> (i32, i32) {
    %c0_i32 = arith.constant 0 : i32
    %c0_i32_0 = arith.constant 0 : i32
    return %c0_i32, %arg1 : i32, i32
  }
  func.func @transform_1(%arg0: i32, %arg1: i32) -> (i32, i32) {
    %c0_i32 = arith.constant 0 : i32
    return %arg1, %arg0 : i32, i32
  }
  func.func @transform_2(%arg0: i32, %arg1: i32) -> (i32, i32) {
    %c0_i32 = arith.constant 0 : i32
    %c0_i32_0 = arith.constant 0 : i32
    return %c0_i32, %arg0 : i32, i32
  }
  func.func @transform_3(%arg0: i32, %arg1: i32) -> (i32, i32) {
    %c0_i32 = arith.constant 0 : i32
    %c0_i32_0 = arith.constant 0 : i32
    return %c0_i32, %arg0 : i32, i32
  }
  func.func @transform_4(%arg0: i32, %arg1: i32) -> (i32, i32) {
    %c0_i32 = arith.constant 0 : i32
    %c0_i32_0 = arith.constant 0 : i32
    return %c0_i32, %arg0 : i32, i32
  }
}

module attributes {stable_mosaic.version = 11 : i64} {
  func.func @_linear_bn_relu_kernel(%arg0: i32, %arg1: i32, %arg2: memref<16x128xbf16, #tpu.memory_space<vmem>>, %arg3: memref<128x256xbf16, #tpu.memory_space<vmem>>, %arg4: memref<1x256xf32, #tpu.memory_space<vmem>>, %arg5: memref<1x256xf32, #tpu.memory_space<vmem>>, %arg6: memref<16x256xbf16, #tpu.memory_space<vmem>>, %arg7: memref<16x256xf32, #tpu.memory_space<vmem>>) attributes {dimension_semantics = [#tpu.dimension_semantics<parallel>, #tpu.dimension_semantics<arbitrary>], iteration_bounds = array<i64: 1, 1>, scalar_prefetch = 0 : i64, scratch_operands = 1 : i64, tpu.core_type = #tpu.core_type<tc>, window_params = [{transform_indices = @transform_0, window_bounds = array<i64: 16, 128>}, {transform_indices = @transform_1, window_bounds = array<i64: 128, 256>}, {transform_indices = @transform_2, window_bounds = array<i64: 1, 256>}, {transform_indices = @transform_3, window_bounds = array<i64: 1, 256>}, {transform_indices = @transform_4, window_bounds = array<i64: 16, 256>}]} {
    %c0_i32 = arith.constant 0 : i32
    %0 = arith.cmpi eq, %arg1, %c0_i32 : i32
    %1 = arith.extui %0 : i1 to i32
    %c0_i32_0 = arith.constant 0 : i32
    %2 = arith.cmpi ne, %1, %c0_i32_0 : i32
    scf.if %2 {
      %cst_10 = arith.constant 0.000000e+00 : f32
      %12 = vector.broadcast %cst_10 : f32 to vector<16x256xf32>
      %c0_11 = arith.constant 0 : index
      %c0_12 = arith.constant 0 : index
      %13 = vector.load %arg7[%c0_11, %c0_12] : memref<16x256xf32, #tpu.memory_space<vmem>>, vector<16x256xf32>
      tpu.vector_store %arg7[%c0_11, %c0_12], %12 {strides = array<i32>} : memref<16x256xf32, #tpu.memory_space<vmem>>, vector<16x256xf32>,
    } else {
    }
    %c0 = arith.constant 0 : index
    %c0_1 = arith.constant 0 : index
    %3 = vector.load %arg7[%c0, %c0_1] : memref<16x256xf32, #tpu.memory_space<vmem>>, vector<16x256xf32>
    %c0_2 = arith.constant 0 : index
    %c0_3 = arith.constant 0 : index
    %4 = vector.load %arg2[%c0_2, %c0_3] : memref<16x128xbf16, #tpu.memory_space<vmem>>, vector<16x128xbf16>
    %c0_4 = arith.constant 0 : index
    %c0_5 = arith.constant 0 : index
    %5 = vector.load %arg3[%c0_4, %c0_5] : memref<128x256xbf16, #tpu.memory_space<vmem>>, vector<128x256xbf16>
    %cst = arith.constant dense<0.000000e+00> : vector<16x256xf32>
    %6 = tpu.matmul %4, %5, %cst {dimension_numbers = #tpu.dot_dimension_numbers<[1], [0], [0], [1], [0, 0, 1, 1], [], []>} : vector<16x128xbf16>, vector<128x256xbf16>, vector<16x256xf32> -> vector<16x256xf32>
    %7 = arith.addf %3, %6 : vector<16x256xf32>
    %c0_6 = arith.constant 0 : index
    %c0_7 = arith.constant 0 : index
    %8 = vector.load %arg7[%c0_6, %c0_7] : memref<16x256xf32, #tpu.memory_space<vmem>>, vector<16x256xf32>
    tpu.vector_store %arg7[%c0_6, %c0_7], %7 {strides = array<i32>} : memref<16x256xf32, #tpu.memory_space<vmem>>, vector<16x256xf32>,
    %c0_i32_8 = arith.constant 0 : i32
    %9 = arith.cmpi eq, %arg1, %c0_i32_8 : i32
    %10 = arith.extui %9 : i1 to i32
    %c0_i32_9 = arith.constant 0 : i32
    %11 = arith.cmpi ne, %10, %c0_i32_9 : i32
    scf.if %11 {
      %c0_10 = arith.constant 0 : index
      %c0_11 = arith.constant 0 : index
      %12 = vector.load %arg7[%c0_10, %c0_11] : memref<16x256xf32, #tpu.memory_space<vmem>>, vector<16x256xf32>
      %cst_12 = arith.constant dense<0.000000e+00> : vector<256xf32>
      %13 = vector.multi_reduction <add>, %12, %cst_12 [0] : vector<16x256xf32> to vector<256xf32>
      %14 = vector.shape_cast %13 : vector<256xf32> to vector<1x256xf32>
      %cst_13 = arith.constant 6.250000e-02 : f32
      %15 = vector.broadcast %cst_13 : f32 to vector<1x256xf32>
      %16 = arith.mulf %14, %15 : vector<1x256xf32>
      %17 = arith.mulf %12, %12 : vector<16x256xf32>
      %cst_14 = arith.constant dense<0.000000e+00> : vector<256xf32>
      %18 = vector.multi_reduction <add>, %17, %cst_14 [0] : vector<16x256xf32> to vector<256xf32>
      %19 = vector.shape_cast %18 : vector<256xf32> to vector<1x256xf32>
      %cst_15 = arith.constant 6.250000e-02 : f32
      %20 = vector.broadcast %cst_15 : f32 to vector<1x256xf32>
      %21 = arith.mulf %19, %20 : vector<1x256xf32>
      %22 = arith.mulf %16, %16 : vector<1x256xf32>
      %23 = arith.subf %21, %22 : vector<1x256xf32>
      %cst_16 = arith.constant 0.000000e+00 : f32
      %24 = vector.broadcast %cst_16 : f32 to vector<1x256xf32>
      %25 = arith.maximumf %23, %24 : vector<1x256xf32>
      %26 = vector.broadcast %16 : vector<1x256xf32> to vector<16x256xf32>
      %27 = arith.subf %12, %26 : vector<16x256xf32>
      %cst_17 = arith.constant 9.99999974E-6 : f32
      %28 = vector.broadcast %cst_17 : f32 to vector<1x256xf32>
      %29 = arith.addf %25, %28 : vector<1x256xf32>
      %30 = math.rsqrt %29 : vector<1x256xf32>
      %31 = vector.broadcast %30 : vector<1x256xf32> to vector<16x256xf32>
      %32 = arith.mulf %27, %31 : vector<16x256xf32>
      %c0_18 = arith.constant 0 : index
      %c0_19 = arith.constant 0 : index
      %33 = vector.load %arg4[%c0_18, %c0_19] : memref<1x256xf32, #tpu.memory_space<vmem>>, vector<1x256xf32>
      %34 = vector.broadcast %33 : vector<1x256xf32> to vector<16x256xf32>
      %35 = arith.mulf %32, %34 : vector<16x256xf32>
      %c0_20 = arith.constant 0 : index
      %c0_21 = arith.constant 0 : index
      %36 = vector.load %arg5[%c0_20, %c0_21] : memref<1x256xf32, #tpu.memory_space<vmem>>, vector<1x256xf32>
      %37 = vector.broadcast %36 : vector<1x256xf32> to vector<16x256xf32>
      %38 = arith.addf %35, %37 : vector<16x256xf32>
      %cst_22 = arith.constant 0.000000e+00 : f32
      %39 = vector.broadcast %cst_22 : f32 to vector<16x256xf32>
      %40 = arith.maximumf %38, %39 : vector<16x256xf32>
      %41 = arith.truncf %40 : vector<16x256xf32> to vector<16x256xbf16>
      %c0_23 = arith.constant 0 : index
      %c0_24 = arith.constant 0 : index
      %42 = vector.load %arg6[%c0_23, %c0_24] : memref<16x256xbf16, #tpu.memory_space<vmem>>, vector<16x256xbf16>
      tpu.vector_store %arg6[%c0_23, %c0_24], %41 {strides = array<i32>} : memref<16x256xbf16, #tpu.memory_space<vmem>>, vector<16x256xbf16>,
    } else {
    }
    return
  }
  func.func @transform_0(%arg0: i32, %arg1: i32) -> (i32, i32) {
    %c0_i32 = arith.constant 0 : i32
    %c0_i32_0 = arith.constant 0 : i32
    return %c0_i32, %arg1 : i32, i32
  }
  func.func @transform_1(%arg0: i32, %arg1: i32) -> (i32, i32) {
    %c0_i32 = arith.constant 0 : i32
    return %arg1, %arg0 : i32, i32
  }
  func.func @transform_2(%arg0: i32, %arg1: i32) -> (i32, i32) {
    %c0_i32 = arith.constant 0 : i32
    %c0_i32_0 = arith.constant 0 : i32
    return %c0_i32, %arg0 : i32, i32
  }
  func.func @transform_3(%arg0: i32, %arg1: i32) -> (i32, i32) {
    %c0_i32 = arith.constant 0 : i32
    %c0_i32_0 = arith.constant 0 : i32
    return %c0_i32, %arg0 : i32, i32
  }
  func.func @transform_4(%arg0: i32, %arg1: i32) -> (i32, i32) {
    %c0_i32 = arith.constant 0 : i32
    %c0_i32_0 = arith.constant 0 : i32
    return %c0_i32, %arg0 : i32, i32
  }
}

module attributes {stable_mosaic.version = 11 : i64} {
  func.func @_barlow_loss_kernel(%arg0: i32, %arg1: i32, %arg2: memref<16x128xbf16, #tpu.memory_space<vmem>>, %arg3: memref<16x128xbf16, #tpu.memory_space<vmem>>, %arg4: memref<1x1xf32, #tpu.memory_space<smem>>) attributes {dimension_semantics = [#tpu.dimension_semantics<parallel>, #tpu.dimension_semantics<arbitrary>], iteration_bounds = array<i64: 1, 1>, scalar_prefetch = 0 : i64, scratch_operands = 0 : i64, tpu.core_type = #tpu.core_type<tc>, window_params = [{transform_indices = @transform_0, window_bounds = array<i64: 16, 128>}, {transform_indices = @transform_1, window_bounds = array<i64: 16, 128>}, {transform_indices = @transform_2, window_bounds = array<i64: 1, 1>}]} {
    %c0_i32 = arith.constant 0 : i32
    %0 = arith.cmpi eq, %arg1, %c0_i32 : i32
    %1 = arith.extui %0 : i1 to i32
    %c0_i32_0 = arith.constant 0 : i32
    %2 = arith.cmpi ne, %1, %c0_i32_0 : i32
    scf.if %2 {
      %cst_11 = arith.constant 0.000000e+00 : f32
      %c0_12 = arith.constant 0 : index
      %c0_13 = arith.constant 0 : index
      %18 = memref.load %arg4[%c0_12, %c0_13] : memref<1x1xf32, #tpu.memory_space<smem>>
      memref.store %cst_11, %arg4[%c0_12, %c0_13] : memref<1x1xf32, #tpu.memory_space<smem>>
    } else {
    }
    %c0 = arith.constant 0 : index
    %c0_1 = arith.constant 0 : index
    %3 = vector.load %arg2[%c0, %c0_1] : memref<16x128xbf16, #tpu.memory_space<vmem>>, vector<16x128xbf16>
    %c0_2 = arith.constant 0 : index
    %c0_3 = arith.constant 0 : index
    %4 = vector.load %arg3[%c0_2, %c0_3] : memref<16x128xbf16, #tpu.memory_space<vmem>>, vector<16x128xbf16>
    %cst = arith.constant dense<0.000000e+00> : vector<128x128xf32>
    %5 = tpu.matmul %3, %4, %cst {dimension_numbers = #tpu.dot_dimension_numbers<[0], [0], [1], [1], [0, 1, 1, 1], [], []>} : vector<16x128xbf16>, vector<16x128xbf16>, vector<128x128xf32> -> vector<128x128xf32>
    %c0_4 = arith.constant 0 : index
    %c0_5 = arith.constant 0 : index
    %6 = memref.load %arg4[%c0_4, %c0_5] : memref<1x1xf32, #tpu.memory_space<smem>>
    %7 = arith.mulf %5, %5 : vector<128x128xf32>
    %8 = vector.shape_cast %7 : vector<128x128xf32> to vector<1x128x128xf32>
    %cst_6 = arith.constant dense<0.000000e+00> : vector<1xf32>
    %9 = vector.multi_reduction <add>, %8, %cst_6 [1, 2] : vector<1x128x128xf32> to vector<1xf32>
    %10 = vector.shape_cast %9 : vector<1xf32> to vector<1x1x1xf32>
    %11 = vector.extract %10[0, 0, 0] : f32 from vector<1x1x1xf32>
    %cst_7 = arith.constant 1.99218757E-5 : f32
    %12 = arith.mulf %cst_7, %11 : f32
    %13 = arith.addf %6, %12 : f32
    %c0_8 = arith.constant 0 : index
    %c0_9 = arith.constant 0 : index
    %14 = memref.load %arg4[%c0_8, %c0_9] : memref<1x1xf32, #tpu.memory_space<smem>>
    memref.store %13, %arg4[%c0_8, %c0_9] : memref<1x1xf32, #tpu.memory_space<smem>>
    %15 = arith.cmpi eq, %arg0, %arg1 : i32
    %16 = arith.extui %15 : i1 to i32
    %c0_i32_10 = arith.constant 0 : i32
    %17 = arith.cmpi ne, %16, %c0_i32_10 : i32
    scf.if %17 {
      %cst_11 = arith.constant 6.250000e-02 : f32
      %18 = vector.broadcast %cst_11 : f32 to vector<128x128xf32>
      %19 = arith.mulf %5, %18 : vector<128x128xf32>
      %20 = tpu.iota {dimensions = array<i32: 0>} : vector<128x128xi32>
      %21 = tpu.iota {dimensions = array<i32: 1>} : vector<128x128xi32>
      %22 = arith.cmpi eq, %20, %21 : vector<128x128xi32>
      %23 = arith.mulf %19, %19 : vector<128x128xf32>
      %cst_12 = arith.constant 0.000000e+00 : f32
      %24 = vector.broadcast %cst_12 : f32 to vector<128x128xf32>
      %25 = arith.select %22, %23, %24 : vector<128x128xi1>, vector<128x128xf32>
      %26 = vector.shape_cast %25 : vector<128x128xf32> to vector<1x128x128xf32>
      %cst_13 = arith.constant dense<0.000000e+00> : vector<1xf32>
      %27 = vector.multi_reduction <add>, %26, %cst_13 [1, 2] : vector<1x128x128xf32> to vector<1xf32>
      %28 = vector.shape_cast %27 : vector<1xf32> to vector<1x1x1xf32>
      %29 = vector.extract %28[0, 0, 0] : f32 from vector<1x1x1xf32>
      %cst_14 = arith.constant 1.000000e+00 : f32
      %30 = vector.broadcast %cst_14 : f32 to vector<128x128xf32>
      %31 = arith.subf %19, %30 : vector<128x128xf32>
      %32 = arith.mulf %31, %31 : vector<128x128xf32>
      %cst_15 = arith.constant 0.000000e+00 : f32
      %33 = vector.broadcast %cst_15 : f32 to vector<128x128xf32>
      %34 = arith.select %22, %32, %33 : vector<128x128xi1>, vector<128x128xf32>
      %35 = vector.shape_cast %34 : vector<128x128xf32> to vector<1x128x128xf32>
      %cst_16 = arith.constant dense<0.000000e+00> : vector<1xf32>
      %36 = vector.multi_reduction <add>, %35, %cst_16 [1, 2] : vector<1x128x128xf32> to vector<1xf32>
      %37 = vector.shape_cast %36 : vector<1xf32> to vector<1x1x1xf32>
      %38 = vector.extract %37[0, 0, 0] : f32 from vector<1x1x1xf32>
      %c0_17 = arith.constant 0 : index
      %c0_18 = arith.constant 0 : index
      %39 = memref.load %arg4[%c0_17, %c0_18] : memref<1x1xf32, #tpu.memory_space<smem>>
      %cst_19 = arith.constant 5.100000e-03 : f32
      %40 = arith.mulf %cst_19, %29 : f32
      %41 = arith.subf %38, %40 : f32
      %42 = arith.addf %39, %41 : f32
      %c0_20 = arith.constant 0 : index
      %c0_21 = arith.constant 0 : index
      %43 = memref.load %arg4[%c0_20, %c0_21] : memref<1x1xf32, #tpu.memory_space<smem>>
      memref.store %42, %arg4[%c0_20, %c0_21] : memref<1x1xf32, #tpu.memory_space<smem>>
    } else {
    }
    return
  }
  func.func @transform_0(%arg0: i32, %arg1: i32) -> (i32, i32) {
    %c0_i32 = arith.constant 0 : i32
    %c0_i32_0 = arith.constant 0 : i32
    return %c0_i32, %arg0 : i32, i32
  }
  func.func @transform_1(%arg0: i32, %arg1: i32) -> (i32, i32) {
    %c0_i32 = arith.constant 0 : i32
    %c0_i32_0 = arith.constant 0 : i32
    return %c0_i32, %arg1 : i32, i32
  }
  func.func @transform_2(%arg0: i32, %arg1: i32) -> (i32, i32) {
    %c0_i32 = arith.constant 0 : i32
    %c0_i32_0 = arith.constant 0 : i32
    return %arg0, %c0_i32 : i32, i32
  }
}

module attributes {stable_mosaic.version = 11 : i64} {
  func.func @_linear_bn_relu_kernel(%arg0: i32, %arg1: i32, %arg2: memref<16x256xbf16, #tpu.memory_space<vmem>>, %arg3: memref<256x256xbf16, #tpu.memory_space<vmem>>, %arg4: memref<1x256xf32, #tpu.memory_space<vmem>>, %arg5: memref<1x256xf32, #tpu.memory_space<vmem>>, %arg6: memref<16x256xbf16, #tpu.memory_space<vmem>>, %arg7: memref<16x256xf32, #tpu.memory_space<vmem>>) attributes {dimension_semantics = [#tpu.dimension_semantics<parallel>, #tpu.dimension_semantics<arbitrary>], iteration_bounds = array<i64: 1, 1>, scalar_prefetch = 0 : i64, scratch_operands = 1 : i64, tpu.core_type = #tpu.core_type<tc>, window_params = [{transform_indices = @transform_0, window_bounds = array<i64: 16, 256>}, {transform_indices = @transform_1, window_bounds = array<i64: 256, 256>}, {transform_indices = @transform_2, window_bounds = array<i64: 1, 256>}, {transform_indices = @transform_3, window_bounds = array<i64: 1, 256>}, {transform_indices = @transform_4, window_bounds = array<i64: 16, 256>}]} {
    %c0_i32 = arith.constant 0 : i32
    %0 = arith.cmpi eq, %arg1, %c0_i32 : i32
    %1 = arith.extui %0 : i1 to i32
    %c0_i32_0 = arith.constant 0 : i32
    %2 = arith.cmpi ne, %1, %c0_i32_0 : i32
    scf.if %2 {
      %cst_10 = arith.constant 0.000000e+00 : f32
      %12 = vector.broadcast %cst_10 : f32 to vector<16x256xf32>
      %c0_11 = arith.constant 0 : index
      %c0_12 = arith.constant 0 : index
      %13 = vector.load %arg7[%c0_11, %c0_12] : memref<16x256xf32, #tpu.memory_space<vmem>>, vector<16x256xf32>
      tpu.vector_store %arg7[%c0_11, %c0_12], %12 {strides = array<i32>} : memref<16x256xf32, #tpu.memory_space<vmem>>, vector<16x256xf32>,
    } else {
    }
    %c0 = arith.constant 0 : index
    %c0_1 = arith.constant 0 : index
    %3 = vector.load %arg7[%c0, %c0_1] : memref<16x256xf32, #tpu.memory_space<vmem>>, vector<16x256xf32>
    %c0_2 = arith.constant 0 : index
    %c0_3 = arith.constant 0 : index
    %4 = vector.load %arg2[%c0_2, %c0_3] : memref<16x256xbf16, #tpu.memory_space<vmem>>, vector<16x256xbf16>
    %c0_4 = arith.constant 0 : index
    %c0_5 = arith.constant 0 : index
    %5 = vector.load %arg3[%c0_4, %c0_5] : memref<256x256xbf16, #tpu.memory_space<vmem>>, vector<256x256xbf16>
    %cst = arith.constant dense<0.000000e+00> : vector<16x256xf32>
    %6 = tpu.matmul %4, %5, %cst {dimension_numbers = #tpu.dot_dimension_numbers<[1], [0], [0], [1], [0, 0, 1, 1], [], []>} : vector<16x256xbf16>, vector<256x256xbf16>, vector<16x256xf32> -> vector<16x256xf32>
    %7 = arith.addf %3, %6 : vector<16x256xf32>
    %c0_6 = arith.constant 0 : index
    %c0_7 = arith.constant 0 : index
    %8 = vector.load %arg7[%c0_6, %c0_7] : memref<16x256xf32, #tpu.memory_space<vmem>>, vector<16x256xf32>
    tpu.vector_store %arg7[%c0_6, %c0_7], %7 {strides = array<i32>} : memref<16x256xf32, #tpu.memory_space<vmem>>, vector<16x256xf32>,
    %c0_i32_8 = arith.constant 0 : i32
    %9 = arith.cmpi eq, %arg1, %c0_i32_8 : i32
    %10 = arith.extui %9 : i1 to i32
    %c0_i32_9 = arith.constant 0 : i32
    %11 = arith.cmpi ne, %10, %c0_i32_9 : i32
    scf.if %11 {
      %c0_10 = arith.constant 0 : index
      %c0_11 = arith.constant 0 : index
      %12 = vector.load %arg7[%c0_10, %c0_11] : memref<16x256xf32, #tpu.memory_space<vmem>>, vector<16x256xf32>
      %cst_12 = arith.constant dense<0.000000e+00> : vector<256xf32>
      %13 = vector.multi_reduction <add>, %12, %cst_12 [0] : vector<16x256xf32> to vector<256xf32>
      %14 = vector.shape_cast %13 : vector<256xf32> to vector<1x256xf32>
      %cst_13 = arith.constant 6.250000e-02 : f32
      %15 = vector.broadcast %cst_13 : f32 to vector<1x256xf32>
      %16 = arith.mulf %14, %15 : vector<1x256xf32>
      %17 = arith.mulf %12, %12 : vector<16x256xf32>
      %cst_14 = arith.constant dense<0.000000e+00> : vector<256xf32>
      %18 = vector.multi_reduction <add>, %17, %cst_14 [0] : vector<16x256xf32> to vector<256xf32>
      %19 = vector.shape_cast %18 : vector<256xf32> to vector<1x256xf32>
      %cst_15 = arith.constant 6.250000e-02 : f32
      %20 = vector.broadcast %cst_15 : f32 to vector<1x256xf32>
      %21 = arith.mulf %19, %20 : vector<1x256xf32>
      %22 = arith.mulf %16, %16 : vector<1x256xf32>
      %23 = arith.subf %21, %22 : vector<1x256xf32>
      %cst_16 = arith.constant 0.000000e+00 : f32
      %24 = vector.broadcast %cst_16 : f32 to vector<1x256xf32>
      %25 = arith.maximumf %23, %24 : vector<1x256xf32>
      %26 = vector.broadcast %16 : vector<1x256xf32> to vector<16x256xf32>
      %27 = arith.subf %12, %26 : vector<16x256xf32>
      %cst_17 = arith.constant 9.99999974E-6 : f32
      %28 = vector.broadcast %cst_17 : f32 to vector<1x256xf32>
      %29 = arith.addf %25, %28 : vector<1x256xf32>
      %30 = math.rsqrt %29 : vector<1x256xf32>
      %31 = vector.broadcast %30 : vector<1x256xf32> to vector<16x256xf32>
      %32 = arith.mulf %27, %31 : vector<16x256xf32>
      %c0_18 = arith.constant 0 : index
      %c0_19 = arith.constant 0 : index
      %33 = vector.load %arg4[%c0_18, %c0_19] : memref<1x256xf32, #tpu.memory_space<vmem>>, vector<1x256xf32>
      %34 = vector.broadcast %33 : vector<1x256xf32> to vector<16x256xf32>
      %35 = arith.mulf %32, %34 : vector<16x256xf32>
      %c0_20 = arith.constant 0 : index
      %c0_21 = arith.constant 0 : index
      %36 = vector.load %arg5[%c0_20, %c0_21] : memref<1x256xf32, #tpu.memory_space<vmem>>, vector<1x256xf32>
      %37 = vector.broadcast %36 : vector<1x256xf32> to vector<16x256xf32>
      %38 = arith.addf %35, %37 : vector<16x256xf32>
      %cst_22 = arith.constant 0.000000e+00 : f32
      %39 = vector.broadcast %cst_22 : f32 to vector<16x256xf32>
      %40 = arith.maximumf %38, %39 : vector<16x256xf32>
      %41 = arith.truncf %40 : vector<16x256xf32> to vector<16x256xbf16>
      %c0_23 = arith.constant 0 : index
      %c0_24 = arith.constant 0 : index
      %42 = vector.load %arg6[%c0_23, %c0_24] : memref<16x256xbf16, #tpu.memory_space<vmem>>, vector<16x256xbf16>
      tpu.vector_store %arg6[%c0_23, %c0_24], %41 {strides = array<i32>} : memref<16x256xbf16, #tpu.memory_space<vmem>>, vector<16x256xbf16>,
    } else {
    }
    return
  }
  func.func @transform_0(%arg0: i32, %arg1: i32) -> (i32, i32) {
    %c0_i32 = arith.constant 0 : i32
    %c0_i32_0 = arith.constant 0 : i32
    return %c0_i32, %arg1 : i32, i32
  }
  func.func @transform_1(%arg0: i32, %arg1: i32) -> (i32, i32) {
    %c0_i32 = arith.constant 0 : i32
    return %arg1, %arg0 : i32, i32
  }
  func.func @transform_2(%arg0: i32, %arg1: i32) -> (i32, i32) {
    %c0_i32 = arith.constant 0 : i32
    %c0_i32_0 = arith.constant 0 : i32
    return %c0_i32, %arg0 : i32, i32
  }
  func.func @transform_3(%arg0: i32, %arg1: i32) -> (i32, i32) {
    %c0_i32 = arith.constant 0 : i32
    %c0_i32_0 = arith.constant 0 : i32
    return %c0_i32, %arg0 : i32, i32
  }
  func.func @transform_4(%arg0: i32, %arg1: i32) -> (i32, i32) {
    %c0_i32 = arith.constant 0 : i32
    %c0_i32_0 = arith.constant 0 : i32
    return %c0_i32, %arg0 : i32, i32
  }
}

</mosaic_0001>

<bundles_post_ra>
// kernel: _lambda_.8
= control target key start
LH: loop header
LB: loop body
LE: loop exit
PB: predicated region body
PF: predicated region fallthrough
CT: control target
= control target key end

     0   :  { %9 = vsyncpa [#allocation4], 0  ;;  %s534_s15 = smov [#allocation3]   ;;  %s616_s0 = inlined_call_operand.vmem [shape: bf16[16,256], index: 0, kind: input, shape index: {}]   ;;  %s617_s1 = inlined_call_operand.hbm [shape: bf16[256,256], index: 1, kind: input, shape index: {}]   ;;  %s618_s2 = inlined_call_operand.vmem [shape: f32[1,256], index: 2, kind: input, shape index: {}]   ;;  %s619_s3 = inlined_call_operand.vmem [shape: f32[1,256], index: 3, kind: input, shape index: {}]   ;;  %s620_s4 = inlined_call_operand.vmem [shape: bf16[16,256], index: 4, kind: output, shape index: {}]  }
   0x1   :  { %s17_s16 = sshll.u32 %s534_s15, 4  ;;  %s510_s19 = scalar_lea.hbm %s617_s1, 4096  ;;  %s18_s16 = int_to_ptr.vmem [resolvable:$true] %s17_s16 }
   0x2   :  { %p511_p0 = scmp.ne.s32.totalorder %s617_s1, %s510_s19  ;;  %p514_p1 = scmp.lt.u32.totalorder %s510_s19, %s617_s1 }
   0x4   :  { %p516_p2 = pnand %p514_p1, %p511_p0 }
   0x6   :  { %519 = shalt.err (!%p516_p2)
}
   0x7   :  { %s520_s24 = scalar_lea.vmem %s18_s16, 4096  ;;  %p525_p4 = scmp.lt.s32.totalorder %s18_s16, %s18_s16 }
   0x8   :  { %p521_p3 = scmp.ne.s32.totalorder %s18_s16, %s520_s24  ;;  %p526_p5 = scmp.lt.s32.totalorder %s520_s24, %s520_s24 }
   0xa   :  { %p527_p6 = por %p526_p5, %p525_p4 }
   0xc   :  { %p528_p7 = pnand %p527_p6, %p521_p3 }
   0xe   :  { %531 = shalt.err (!%p528_p7)
}
   0xf   :  { %s535_s25 = smov 128   ;;  %s536_s26 = smov 8  }
  0x10   :  { %23 = dma.hbm_to_vmem [thread:$0]  %s617_s1, 4096, %s18_s16, [#allocation4], %s535_s25, %s535_s25, %s536_s26  }
  0x11   :  { %532 = dma.done.wait [#allocation4], 4096  }
  0x12   :  { %533 = vsyncadd [#allocation4], 4294963200  ;;  %v455_v0 = vld [vmem:[#allocation3 + $0x4] ss:$8 sps:$4 sm:$0xff]   ;;  %v457_v1 = vld [vmem:[#allocation3] ss:$8 sps:$4 sm:$0xff]  }
  0x13   :  { %247 = vmatprep.subr.bf16.mxu0 %v455_v0  ;;  %v458_v2 = vld [vmem:[#allocation3 + $0x14] ss:$8 sps:$4 sm:$0xff]   ;;  %v460_v3 = vld [vmem:[#allocation3 + $0x10] ss:$8 sps:$4 sm:$0xff]   ;;  %v461_v4 = vld [vmem:[#allocation3 + $0x24] ss:$8 sps:$4 sm:$0xff]  }
  0x14   :  { %248 = vmatpush1.bf16.msra.mxu0 %v457_v1  ;;  %v463_v5 = vld [vmem:[#allocation3 + $0x20] ss:$8 sps:$4 sm:$0xff]   ;;  %v464_v6 = vld [vmem:[#allocation3 + $0x34] ss:$8 sps:$4 sm:$0xff]   ;;  %v466_v7 = vld [vmem:[#allocation3 + $0x30] ss:$8 sps:$4 sm:$0xff]  }
  0x15   :  { %249 = vmatprep.subr.bf16.mxu0 %v458_v2  ;;  %v467_v8 = vld [vmem:[#allocation3 + $0x44] ss:$8 sps:$4 sm:$0xff]   ;;  %v469_v9 = vld [vmem:[#allocation3 + $0x40] ss:$8 sps:$4 sm:$0xff]   ;;  %v470_v10 = vld [vmem:[#allocation3 + $0x54] ss:$8 sps:$4 sm:$0xff]  }
  0x16   :  { %v472_v11 = vld [vmem:[#allocation3 + $0x50] ss:$8 sps:$4 sm:$0xff]   ;;  %v473_v12 = vld [vmem:[#allocation3 + $0x64] ss:$8 sps:$4 sm:$0xff]   ;;  %v475_v14 = vld [vmem:[#allocation3 + $0x60] ss:$8 sps:$4 sm:$0xff]  }
  0x17   :  { %v505_v13 = vld [vmem:[%s616_s0 + $0x4] ss:$8 sps:$4 sm:$0xff]   ;;  %v478_v16 = vld [vmem:[#allocation3 + $0x70] ss:$8 sps:$4 sm:$0xff]   ;;  %v481_v18 = vld [vmem:[#allocation3 + $0x80] ss:$8 sps:$4 sm:$0xff]  }
  0x18   :  { %250 = vmatpush1.bf16.msra.mxu0 %v460_v3  ;;  %v476_v15 = vld [vmem:[#allocation3 + $0x74] ss:$8 sps:$4 sm:$0xff]   ;;  %279 = vmatprep.mubr.bf16.mxu0 %v505_v13  ;;  %v479_v17 = vld [vmem:[#allocation3 + $0x84] ss:$8 sps:$4 sm:$0xff]   ;;  %v484_v20 = vld [vmem:[#allocation3 + $0x90] ss:$8 sps:$4 sm:$0xff]  }
  0x19   :  { %251 = vmatprep.subr.bf16.mxu0 %v461_v4  ;;  %v482_v19 = vld [vmem:[#allocation3 + $0x94] ss:$8 sps:$4 sm:$0xff]   ;;  %v485_v21 = vld [vmem:[#allocation3 + $0xa4] ss:$8 sps:$4 sm:$0xff]   ;;  %v487_v22 = vld [vmem:[#allocation3 + $0xa0] ss:$8 sps:$4 sm:$0xff]  }
  0x1a   :  { %v488_v23 = vld [vmem:[#allocation3 + $0xb4] ss:$8 sps:$4 sm:$0xff]   ;;  %v490_v24 = vld [vmem:[#allocation3 + $0xb0] ss:$8 sps:$4 sm:$0xff]   ;;  %v491_v25 = vld [vmem:[#allocation3 + $0xc4] ss:$8 sps:$4 sm:$0xff]  }
  0x1b   :  { %v493_v26 = vld [vmem:[#allocation3 + $0xc0] ss:$8 sps:$4 sm:$0xff]   ;;  %v494_v27 = vld [vmem:[#allocation3 + $0xd4] ss:$8 sps:$4 sm:$0xff]   ;;  %v496_v28 = vld [vmem:[#allocation3 + $0xd0] ss:$8 sps:$4 sm:$0xff]  }
  0x1c   :  { %252 = vmatpush1.bf16.msra.mxu0 %v463_v5  ;;  %v497_v29 = vld [vmem:[#allocation3 + $0xe4] ss:$8 sps:$4 sm:$0xff]   ;;  %v499_v30 = vld [vmem:[#allocation3 + $0xe0] ss:$8 sps:$4 sm:$0xff]   ;;  %v500_v31 = vld [vmem:[#allocation3 + $0xf4] ss:$8 sps:$4 sm:$0xff]  }
  0x1d   :  { %253 = vmatprep.subr.bf16.mxu0 %v464_v6  ;;  %v502_v32 = vld [vmem:[#allocation3 + $0xf0] ss:$8 sps:$4 sm:$0xff]  }
  0x1e   :  { %v503_v33 = vld [vmem:[%s616_s0] ss:$8 sps:$4 sm:$0xff]  }
  0x20   :  { %254 = vmatpush1.bf16.msra.mxu0 %v466_v7 }
  0x21   :  { %255 = vmatprep.subr.bf16.mxu0 %v467_v8 }
  0x24   :  { %256 = vmatpush1.bf16.msra.mxu0 %v469_v9 }
  0x25   :  { %257 = vmatprep.subr.bf16.mxu0 %v470_v10 }
  0x28   :  { %258 = vmatpush1.bf16.msra.mxu0 %v472_v11 }
  0x29   :  { %259 = vmatprep.subr.bf16.mxu0 %v473_v12 }
  0x2c   :  { %260 = vmatpush1.bf16.msra.mxu0 %v475_v14 }
  0x2d   :  { %261 = vmatprep.subr.bf16.mxu0 %v476_v15 }
  0x30   :  { %262 = vmatpush1.bf16.msra.mxu0 %v478_v16 }
  0x31   :  { %263 = vmatprep.subr.bf16.mxu0 %v479_v17 }
  0x34   :  { %264 = vmatpush1.bf16.msra.mxu0 %v481_v18 }
  0x35   :  { %265 = vmatprep.subr.bf16.mxu0 %v482_v19  ;;  %v361_v19 = vlaneseq }
  0x38   :  { %266 = vmatpush1.bf16.msra.mxu0 %v484_v20 }
  0x39   :  { %267 = vmatprep.subr.bf16.mxu0 %v485_v21 }
  0x3c   :  { %268 = vmatpush1.bf16.msra.mxu0 %v487_v22 }
  0x3d   :  { %269 = vmatprep.subr.bf16.mxu0 %v488_v23  ;;  %v362_v23 = vshrl.u32 %v361_v19, 7 }
  0x40   :  { %270 = vmatpush1.bf16.msra.mxu0 %v490_v24  ;;  %v363_v24 = vsub.s32 0, %v362_v23 }
  0x41   :  { %271 = vmatprep.subr.bf16.mxu0 %v491_v25  ;;  %v359_v25 = vld [vmem:[%s618_s2] sm:$0x3] }
  0x44   :  { %272 = vmatpush1.bf16.msra.mxu0 %v493_v26  ;;  %v367_v26 = vsub.s32 1, %v362_v23 }
  0x45   :  { %273 = vmatprep.subr.bf16.mxu0 %v494_v27  ;;  %v375_v27 = vld [vmem:[%s619_s3] sm:$0x3] }
  0x48   :  { %274 = vmatpush1.bf16.msra.mxu0 %v496_v28  ;;  %v364_v28 = vrot.slane %v359_v25, %v363_v24 }
  0x49   :  { %275 = vmatprep.subr.bf16.mxu0 %v497_v29 }
  0x4c   :  { %276 = vmatpush1.bf16.msra.mxu0 %v499_v30  ;;  %v368_v30 = vrot.slane %v359_v25, %v367_v26 }
  0x4d   :  { %277 = vmatprep.subr.bf16.mxu0 %v500_v31 }
  0x50   :  { %278 = vmatpush1.bf16.msra.mxu0 %v502_v32 }
  0x53   :  { %280 = vmatmul.mubr.bf16.vlgmr.msra.gmra.mrb[0].mxu0 %v503_v33 }
 0x126   :  { %v580_v34 = vpop.f32.mrb[0].mxu0 }
 0x127   :  { %v582_v35 = vpop.f32.mrb[1].mxu0  ;;  %v321_v37 = vmul.f32 %v580_v34, %v580_v34 }
 0x128   :  { %v584_v36 = vpop.f32.mrb[2].mxu0  ;;  %v322_v41 = vmul.f32 %v582_v35, %v582_v35 }
 0x129   :  { %v305_v38 = vadd.f32 %v584_v36, %v580_v34  ;;  %v323_v39 = vmul.f32 %v584_v36, %v584_v36  ;;  %v592_v40 = vpop.f32.mrb[3].mxu0 }
 0x12a   :  { %v312_v42 = vadd.f32 %v592_v40, %v582_v35  ;;  %v324_v43 = vmul.f32 %v592_v40, %v592_v40 }
 0x12b   :  { %v306_v44 = vrot.slane %v305_v38, 4  ;;  %v325_v45 = vadd.f32 %v323_v39, %v321_v37  ;;  %v384_v37 = vrot.slane %v375_v27, %v367_v26 }
 0x12c   :  { %v313_v46 = vrot.slane %v312_v42, 4  ;;  %v332_v47 = vadd.f32 %v324_v43, %v322_v41 }
 0x12d   :  { %v307_v48 = vadd.f32 %v306_v44, %v305_v38  ;;  %v326_v49 = vrot.slane %v325_v45, 4 }
 0x12e   :  { %v314_v50 = vadd.f32 %v313_v46, %v312_v42  ;;  %v333_v51 = vrot.slane %v332_v47, 4 }
 0x12f   :  { %v308_v52 = vrot.slane %v307_v48, 2  ;;  %v327_v53 = vadd.f32 %v326_v49, %v325_v45 }
 0x130   :  { %v315_v54 = vrot.slane %v314_v50, 2  ;;  %v334_v55 = vadd.f32 %v333_v51, %v332_v47 }
 0x131   :  { %v309_v56 = vadd.f32 %v308_v52, %v307_v48  ;;  %v328_v57 = vrot.slane %v327_v53, 2 }
 0x132   :  { %v316_v58 = vadd.f32 %v315_v54, %v314_v50  ;;  %v335_v59 = vrot.slane %v334_v55, 2 }
 0x133   :  { %v310_v60 = vrot.slane %v309_v56, 1  ;;  %v329_v61 = vadd.f32 %v328_v57, %v327_v53 }
 0x134   :  { %v317_v62 = vrot.slane %v316_v58, 1  ;;  %v336_v63 = vadd.f32 %v335_v59, %v334_v55 }
 0x135   :  { %v311_v0 = vadd.f32 %v310_v60, %v309_v56  ;;  %v330_v1 = vrot.slane %v329_v61, 1 }
 0x136   :  { %v318_v2 = vadd.f32 %v317_v62, %v316_v58  ;;  %v337_v3 = vrot.slane %v336_v63, 1 }
 0x137   :  { %v319_v4 = vmul.f32 0.0625, %v311_v0  ;;  %v331_v5 = vadd.f32 %v330_v1, %v329_v61 }
 0x138   :  { %v320_v6 = vmul.f32 0.0625, %v318_v2  ;;  %v338_v7 = vadd.f32 %v337_v3, %v336_v63 }
 0x139   :  { %v339_v8 = vmul.f32 0.0625, %v331_v5  ;;  %v341_v9 = vmul.f32 %v319_v4, %v319_v4  ;;  %v347_v10 = vsub.f32 %v580_v34, %v319_v4  ;;  %v349_v11 = vsub.f32 %v584_v36, %v319_v4 }
 0x13a   :  { %v340_v12 = vmul.f32 0.0625, %v338_v7  ;;  %v342_v13 = vmul.f32 %v320_v6, %v320_v6  ;;  %v348_v14 = vsub.f32 %v582_v35, %v320_v6  ;;  %v350_v15 = vsub.f32 %v592_v40, %v320_v6 }
 0x13b   :  { %v343_v16 = vsub.f32 %v339_v8, %v341_v9  ;;  %v380_v34 = vrot.slane %v375_v27, %v363_v24 }
 0x13c   :  { %v344_v17 = vsub.f32 %v340_v12, %v342_v13 }
 0x13d   :  { %v345_v18 = vmax.f32 %v343_v16, 0.0 }
 0x13e   :  { %v346_v20 = vmax.f32 %v344_v17, 0.0 }
 0x13f   :  { %v351_v21 = vadd.f32 1e-05, %v345_v18 }
 0x140   :  { %v352_v22 = vadd.f32 1e-05, %v346_v20 }
 0x141   :  { %506 = vrsqrt.f32 %v351_v21 }
 0x142   :  { %508 = vrsqrt.f32 %v352_v22 }
 0x14b   :  { %v507_v29 = vpop.eup %506 }
 0x14c   :  { %v509_v31 = vpop.eup %508  ;;  %v355_v32 = vmul.f32 %v507_v29, %v347_v10  ;;  %v357_v33 = vmul.f32 %v507_v29, %v349_v11 }
 0x14d   :  { %v356_v35 = vmul.f32 %v509_v31, %v348_v14  ;;  %v358_v36 = vmul.f32 %v509_v31, %v350_v15 }
 0x14e   :  { %v371_v38 = vmul.f32 %v364_v28, %v355_v32  ;;  %v373_v39 = vmul.f32 %v364_v28, %v357_v33 }
 0x14f   :  { %v372_v40 = vmul.f32 %v368_v30, %v356_v35  ;;  %v374_v41 = vmul.f32 %v368_v30, %v358_v36 }
 0x150   :  { %v387_v42 = vadd.f32 %v380_v34, %v371_v38  ;;  %v389_v43 = vadd.f32 %v380_v34, %v373_v39 }
 0x151   :  { %v388_v44 = vadd.f32 %v384_v37, %v372_v40  ;;  %v390_v45 = vadd.f32 %v384_v37, %v374_v41 }
 0x152   :  { %v391_v46 = vmax.f32 %v387_v42, 0.0  ;;  %v393_v47 = vmax.f32 %v389_v43, 0.0 }
 0x153   :  { %v392_v48 = vmax.f32 %v388_v44, 0.0  ;;  %v394_v49 = vmax.f32 %v390_v45, 0.0 }
 0x155   :  { %v450_v50 = vpack.c.bf16 %v392_v48, %v391_v46  ;;  %v451_v51 = vpack.c.bf16 %v394_v49, %v393_v47 }
 0x157   :  { %407 = vst [vmem:[%s620_s4] sm:$0xff] %v450_v50  ;;  %408 = vst [vmem:[%s620_s4 + $0x8] sm:$0xff] %v451_v51 }
 0x158   :  { %413 = vsyncpa [#allocation4], 1 }

// kernel: _lambda_.10
= control target key start
LH: loop header
LB: loop body
LE: loop exit
PB: predicated region body
PF: predicated region fallthrough
CT: control target
= control target key end

     0   :  { %v351_v1 = vmov 0   ;;  %s464_s1 = inlined_call_operand.vmem [shape: bf16[128,256], index: 1, kind: input, shape index: {}]   ;;  %s465_s0 = inlined_call_operand.vmem [shape: bf16[16,128], index: 0, kind: input, shape index: {}]   ;;  %s466_s2 = inlined_call_operand.vmem [shape: f32[1,256], index: 2, kind: input, shape index: {}]   ;;  %s467_s3 = inlined_call_operand.vmem [shape: f32[1,256], index: 3, kind: input, shape index: {}]   ;;  %s468_s4 = inlined_call_operand.vmem [shape: bf16[16,256], index: 4, kind: output, shape index: {}]  }
   0x1   :  { %v322_v0 = vld [vmem:[%s464_s1 + $0x4] ss:$8 sps:$4 sm:$0xff]   ;;  %166 = vmatprep.mubr.bf16.mxu0 %v351_v1  ;;  %v324_v2 = vld [vmem:[%s464_s1] ss:$8 sps:$4 sm:$0xff]   ;;  %v325_v3 = vld [vmem:[%s464_s1 + $0x14] ss:$8 sps:$4 sm:$0xff]  }
   0x2   :  { %134 = vmatprep.subr.bf16.mxu0 %v322_v0  ;;  %v327_v4 = vld [vmem:[%s464_s1 + $0x10] ss:$8 sps:$4 sm:$0xff]   ;;  %v328_v5 = vld [vmem:[%s464_s1 + $0x24] ss:$8 sps:$4 sm:$0xff]   ;;  %v330_v6 = vld [vmem:[%s464_s1 + $0x20] ss:$8 sps:$4 sm:$0xff]  }
   0x3   :  { %135 = vmatpush1.bf16.msra.mxu0 %v324_v2  ;;  %v331_v7 = vld [vmem:[%s464_s1 + $0x34] ss:$8 sps:$4 sm:$0xff]   ;;  %v333_v8 = vld [vmem:[%s464_s1 + $0x30] ss:$8 sps:$4 sm:$0xff]   ;;  %v334_v9 = vld [vmem:[%s464_s1 + $0x44] ss:$8 sps:$4 sm:$0xff]  }
   0x4   :  { %136 = vmatprep.subr.bf16.mxu0 %v325_v3  ;;  %v336_v10 = vld [vmem:[%s464_s1 + $0x40] ss:$8 sps:$4 sm:$0xff]   ;;  %v337_v11 = vld [vmem:[%s464_s1 + $0x54] ss:$8 sps:$4 sm:$0xff]   ;;  %v339_v12 = vld [vmem:[%s464_s1 + $0x50] ss:$8 sps:$4 sm:$0xff]   ;;  %v248_v3 = vlaneseq }
   0x5   :  { %v340_v13 = vld [vmem:[%s464_s1 + $0x64] ss:$8 sps:$4 sm:$0xff]   ;;  %v342_v14 = vld [vmem:[%s464_s1 + $0x60] ss:$8 sps:$4 sm:$0xff]   ;;  %v343_v15 = vld [vmem:[%s464_s1 + $0x74] ss:$8 sps:$4 sm:$0xff]  }
   0x6   :  { %v345_v16 = vld [vmem:[%s464_s1 + $0x70] ss:$8 sps:$4 sm:$0xff]   ;;  %v346_v17 = vld [vmem:[%s465_s0] sm:$0xff]  }
   0x7   :  { %137 = vmatpush1.bf16.msra.mxu0 %v327_v4 }
   0x8   :  { %138 = vmatprep.subr.bf16.mxu0 %v328_v5 }
   0xb   :  { %139 = vmatpush1.bf16.msra.mxu0 %v330_v6 }
   0xc   :  { %140 = vmatprep.subr.bf16.mxu0 %v331_v7  ;;  %v249_v7 = vshrl.u32 %v248_v3, 7 }
   0xf   :  { %141 = vmatpush1.bf16.msra.mxu0 %v333_v8  ;;  %v250_v8 = vsub.s32 0, %v249_v7 }
  0x10   :  { %142 = vmatprep.subr.bf16.mxu0 %v334_v9  ;;  %v246_v9 = vld [vmem:[%s466_s2] sm:$0x3] }
  0x13   :  { %143 = vmatpush1.bf16.msra.mxu0 %v336_v10  ;;  %v254_v10 = vsub.s32 1, %v249_v7 }
  0x14   :  { %144 = vmatprep.subr.bf16.mxu0 %v337_v11  ;;  %v262_v11 = vld [vmem:[%s467_s3] sm:$0x3] }
  0x17   :  { %145 = vmatpush1.bf16.msra.mxu0 %v339_v12  ;;  %v251_v12 = vrot.slane %v246_v9, %v250_v8 }
  0x18   :  { %146 = vmatprep.subr.bf16.mxu0 %v340_v13 }
  0x1b   :  { %147 = vmatpush1.bf16.msra.mxu0 %v342_v14  ;;  %v255_v14 = vrot.slane %v246_v9, %v254_v10 }
  0x1c   :  { %148 = vmatprep.subr.bf16.mxu0 %v343_v15 }
  0x1f   :  { %149 = vmatpush1.bf16.msra.mxu0 %v345_v16 }
  0x22   :  { %167 = vmatmul.mubr.bf16.vlgmr.msra.gmra.mrb[0].mxu0 %v346_v17 }
  0xf5   :  { %v428_v18 = vpop.f32.mrb[0].mxu0 }
  0xf6   :  { %v430_v19 = vpop.f32.mrb[1].mxu0  ;;  %v208_v21 = vmul.f32 %v428_v18, %v428_v18 }
  0xf7   :  { %v432_v20 = vpop.f32.mrb[2].mxu0  ;;  %v209_v25 = vmul.f32 %v430_v19, %v430_v19 }
  0xf8   :  { %v192_v22 = vadd.f32 %v432_v20, %v428_v18  ;;  %v210_v23 = vmul.f32 %v432_v20, %v432_v20  ;;  %v440_v24 = vpop.f32.mrb[3].mxu0 }
  0xf9   :  { %v199_v26 = vadd.f32 %v440_v24, %v430_v19  ;;  %v211_v27 = vmul.f32 %v440_v24, %v440_v24 }
  0xfa   :  { %v193_v28 = vrot.slane %v192_v22, 4  ;;  %v212_v29 = vadd.f32 %v210_v23, %v208_v21  ;;  %v271_v21 = vrot.slane %v262_v11, %v254_v10 }
  0xfb   :  { %v200_v30 = vrot.slane %v199_v26, 4  ;;  %v219_v31 = vadd.f32 %v211_v27, %v209_v25 }
  0xfc   :  { %v194_v32 = vadd.f32 %v193_v28, %v192_v22  ;;  %v213_v33 = vrot.slane %v212_v29, 4 }
  0xfd   :  { %v201_v34 = vadd.f32 %v200_v30, %v199_v26  ;;  %v220_v35 = vrot.slane %v219_v31, 4 }
  0xfe   :  { %v195_v36 = vrot.slane %v194_v32, 2  ;;  %v214_v37 = vadd.f32 %v213_v33, %v212_v29 }
  0xff   :  { %v202_v38 = vrot.slane %v201_v34, 2  ;;  %v221_v39 = vadd.f32 %v220_v35, %v219_v31 }
 0x100   :  { %v196_v40 = vadd.f32 %v195_v36, %v194_v32  ;;  %v215_v41 = vrot.slane %v214_v37, 2 }
 0x101   :  { %v203_v42 = vadd.f32 %v202_v38, %v201_v34  ;;  %v222_v43 = vrot.slane %v221_v39, 2 }
 0x102   :  { %v197_v44 = vrot.slane %v196_v40, 1  ;;  %v216_v45 = vadd.f32 %v215_v41, %v214_v37 }
 0x103   :  { %v204_v46 = vrot.slane %v203_v42, 1  ;;  %v223_v47 = vadd.f32 %v222_v43, %v221_v39 }
 0x104   :  { %v198_v48 = vadd.f32 %v197_v44, %v196_v40  ;;  %v217_v49 = vrot.slane %v216_v45, 1 }
 0x105   :  { %v205_v50 = vadd.f32 %v204_v46, %v203_v42  ;;  %v224_v51 = vrot.slane %v223_v47, 1 }
 0x106   :  { %v206_v52 = vmul.f32 0.0625, %v198_v48  ;;  %v218_v53 = vadd.f32 %v217_v49, %v216_v45 }
 0x107   :  { %v207_v54 = vmul.f32 0.0625, %v205_v50  ;;  %v225_v55 = vadd.f32 %v224_v51, %v223_v47 }
 0x108   :  { %v226_v56 = vmul.f32 0.0625, %v218_v53  ;;  %v228_v57 = vmul.f32 %v206_v52, %v206_v52  ;;  %v234_v58 = vsub.f32 %v428_v18, %v206_v52  ;;  %v236_v59 = vsub.f32 %v432_v20, %v206_v52 }
 0x109   :  { %v227_v60 = vmul.f32 0.0625, %v225_v55  ;;  %v229_v61 = vmul.f32 %v207_v54, %v207_v54  ;;  %v235_v62 = vsub.f32 %v430_v19, %v207_v54  ;;  %v237_v63 = vsub.f32 %v440_v24, %v207_v54 }
 0x10a   :  { %v230_v0 = vsub.f32 %v226_v56, %v228_v57  ;;  %v267_v18 = vrot.slane %v262_v11, %v250_v8 }
 0x10b   :  { %v231_v1 = vsub.f32 %v227_v60, %v229_v61 }
 0x10c   :  { %v232_v2 = vmax.f32 %v230_v0, 0.0 }
 0x10d   :  { %v233_v4 = vmax.f32 %v231_v1, 0.0 }
 0x10e   :  { %v238_v5 = vadd.f32 1e-05, %v232_v2 }
 0x10f   :  { %v239_v6 = vadd.f32 1e-05, %v233_v4 }
 0x110   :  { %347 = vrsqrt.f32 %v238_v5 }
 0x111   :  { %349 = vrsqrt.f32 %v239_v6 }
 0x11a   :  { %v348_v13 = vpop.eup %347 }
 0x11b   :  { %v350_v15 = vpop.eup %349  ;;  %v242_v16 = vmul.f32 %v348_v13, %v234_v58  ;;  %v244_v17 = vmul.f32 %v348_v13, %v236_v59 }
 0x11c   :  { %v243_v19 = vmul.f32 %v350_v15, %v235_v62  ;;  %v245_v20 = vmul.f32 %v350_v15, %v237_v63 }
 0x11d   :  { %v258_v22 = vmul.f32 %v251_v12, %v242_v16  ;;  %v260_v23 = vmul.f32 %v251_v12, %v244_v17 }
 0x11e   :  { %v259_v24 = vmul.f32 %v255_v14, %v243_v19  ;;  %v261_v25 = vmul.f32 %v255_v14, %v245_v20 }
 0x11f   :  { %v274_v26 = vadd.f32 %v267_v18, %v258_v22  ;;  %v276_v27 = vadd.f32 %v267_v18, %v260_v23 }
 0x120   :  { %v275_v28 = vadd.f32 %v271_v21, %v259_v24  ;;  %v277_v29 = vadd.f32 %v271_v21, %v261_v25 }
 0x121   :  { %v278_v30 = vmax.f32 %v274_v26, 0.0  ;;  %v280_v31 = vmax.f32 %v276_v27, 0.0 }
 0x122   :  { %v279_v32 = vmax.f32 %v275_v28, 0.0  ;;  %v281_v33 = vmax.f32 %v277_v29, 0.0 }
 0x124   :  { %v319_v34 = vpack.c.bf16 %v279_v32, %v278_v30  ;;  %v320_v35 = vpack.c.bf16 %v281_v33, %v280_v31 }
 0x126   :  { %294 = vst [vmem:[%s468_s4] sm:$0xff] %v319_v34  ;;  %295 = vst [vmem:[%s468_s4 + $0x8] sm:$0xff] %v320_v35 }

// kernel: _lambda_.9
= control target key start
LH: loop header
LB: loop body
LE: loop exit
PB: predicated region body
PF: predicated region fallthrough
CT: control target
= control target key end

     0   :  { %s409_s1 = inlined_call_operand.vmem [shape: bf16[256,128], index: 1, kind: input, shape index: {}]   ;;  %s410_s2 = inlined_call_operand.vmem [shape: f32[1,128], index: 2, kind: input, shape index: {}]   ;;  %s411_s3 = inlined_call_operand.vmem [shape: f32[1,128], index: 3, kind: input, shape index: {}]   ;;  %s412_s0 = inlined_call_operand.vmem [shape: bf16[16,256], index: 0, kind: input, shape index: {}]   ;;  %s413_s4 = inlined_call_operand.vmem [shape: bf16[16,128], index: 4, kind: output, shape index: {}]  }
   0x1   :  { %v306_v0 = vld [vmem:[%s409_s1 + $0x40] sm:$0xff]   ;;  %v308_v2 = vld [vmem:[%s409_s1 + $0x48] sm:$0xff]   ;;  %v310_v4 = vld [vmem:[%s409_s1 + $0x50] sm:$0xff]  }
   0x2   :  { %v307_v1 = vld [vmem:[%s409_s1] sm:$0xff]   ;;  %284 = vmatprep.subr.bf16.mxu0 %v306_v0  ;;  %v309_v3 = vld [vmem:[%s409_s1 + $0x8] sm:$0xff]   ;;  %v311_v5 = vld [vmem:[%s409_s1 + $0x10] sm:$0xff]  }
   0x3   :  { %285 = vmatpush3.bf16.msra.mxu0 %v307_v1  ;;  %v312_v6 = vld [vmem:[%s409_s1 + $0x58] sm:$0xff]   ;;  %v314_v8 = vld [vmem:[%s409_s1 + $0x60] sm:$0xff]   ;;  %v316_v10 = vld [vmem:[%s409_s1 + $0x68] sm:$0xff]  }
   0x4   :  { %286 = vmatprep.subr.bf16.mxu0 %v308_v2  ;;  %v313_v7 = vld [vmem:[%s409_s1 + $0x18] sm:$0xff]   ;;  %v315_v9 = vld [vmem:[%s409_s1 + $0x20] sm:$0xff]   ;;  %v317_v12 = vld [vmem:[%s409_s1 + $0x28] sm:$0xff]  }
   0x5   :  { %v324_v11 = vld [vmem:[%s412_s0 + $0x4] ss:$8 sps:$4 sm:$0xff]   ;;  %v318_v13 = vld [vmem:[%s409_s1 + $0x70] sm:$0xff]   ;;  %v320_v15 = vld [vmem:[%s409_s1 + $0x78] sm:$0xff]  }
   0x6   :  { %198 = vmatprep.mubr.bf16.mxu0 %v324_v11  ;;  %v319_v14 = vld [vmem:[%s409_s1 + $0x30] sm:$0xff]   ;;  %v321_v16 = vld [vmem:[%s409_s1 + $0x38] sm:$0xff]   ;;  %v322_v17 = vld [vmem:[%s412_s0] ss:$8 sps:$4 sm:$0xff]  }
   0x7   :  { %287 = vmatpush3.bf16.msra.mxu0 %v309_v3 }
   0x8   :  { %288 = vmatprep.subr.bf16.mxu0 %v310_v4 }
   0xb   :  { %289 = vmatpush3.bf16.msra.mxu0 %v311_v5 }
   0xc   :  { %290 = vmatprep.subr.bf16.mxu0 %v312_v6 }
   0xf   :  { %291 = vmatpush3.bf16.msra.mxu0 %v313_v7 }
  0x10   :  { %292 = vmatprep.subr.bf16.mxu0 %v314_v8 }
  0x13   :  { %293 = vmatpush3.bf16.msra.mxu0 %v315_v9 }
  0x14   :  { %294 = vmatprep.subr.bf16.mxu0 %v316_v10 }
  0x17   :  { %295 = vmatpush3.bf16.msra.mxu0 %v317_v12 }
  0x18   :  { %296 = vmatprep.subr.bf16.mxu0 %v318_v13 }
  0x1b   :  { %297 = vmatpush3.bf16.msra.mxu0 %v319_v14 }
  0x1c   :  { %298 = vmatprep.subr.bf16.mxu0 %v320_v15 }
  0x1f   :  { %299 = vmatpush3.bf16.msra.mxu0 %v321_v16 }
  0x22   :  { %199 = vmatmul.mubr.bf16.vlgmr.msra.gmra.mrb[0].mxu0 %v322_v17 }
  0xf5   :  { %v300_v18 = vpop.f32.mrb[0].mxu0 }
  0xf6   :  { %v301_v19 = vpop.f32.mrb[1].mxu0 }
  0xf7   :  { %v302_v20 = vadd.f32 %v301_v19, %v300_v18  ;;  %v303_v21 = vpop.f32.mrb[2].mxu0 }
  0xf8   :  { %v304_v22 = vpop.f32.mrb[3].mxu0 }
  0xf9   :  { %v305_v23 = vadd.f32 %v304_v22, %v303_v21  ;;  %v224_v24 = vmul.f32 %v302_v20, %v302_v20 }
  0xfb   :  { %v216_v25 = vadd.f32 %v305_v23, %v302_v20  ;;  %v225_v26 = vmul.f32 %v305_v23, %v305_v23 }
  0xfd   :  { %v217_v27 = vrot.slane %v216_v25, 4  ;;  %v226_v28 = vadd.f32 %v225_v26, %v224_v24 }
  0xff   :  { %v218_v29 = vadd.f32 %v217_v27, %v216_v25  ;;  %v227_v30 = vrot.slane %v226_v28, 4 }
 0x101   :  { %v219_v31 = vrot.slane %v218_v29, 2  ;;  %v228_v32 = vadd.f32 %v227_v30, %v226_v28 }
 0x103   :  { %v220_v33 = vadd.f32 %v219_v31, %v218_v29  ;;  %v229_v34 = vrot.slane %v228_v32, 2 }
 0x105   :  { %v221_v35 = vrot.slane %v220_v33, 1  ;;  %v230_v36 = vadd.f32 %v229_v34, %v228_v32 }
 0x107   :  { %v222_v37 = vadd.f32 %v221_v35, %v220_v33  ;;  %v231_v38 = vrot.slane %v230_v36, 1 }
 0x109   :  { %v223_v39 = vmul.f32 0.0625, %v222_v37  ;;  %v232_v40 = vadd.f32 %v231_v38, %v230_v36 }
 0x10b   :  { %v233_v41 = vmul.f32 0.0625, %v232_v40  ;;  %v234_v42 = vmul.f32 %v223_v39, %v223_v39  ;;  %v237_v43 = vsub.f32 %v302_v20, %v223_v39  ;;  %v238_v44 = vsub.f32 %v305_v23, %v223_v39 }
 0x10d   :  { %v235_v45 = vsub.f32 %v233_v41, %v234_v42 }
 0x10f   :  { %v236_v46 = vmax.f32 %v235_v45, 0.0 }
 0x111   :  { %v239_v47 = vadd.f32 1e-05, %v236_v46 }
 0x113   :  { %325 = vrsqrt.f32 %v239_v47 }
 0x11d   :  { %v326_v48 = vpop.eup %325 }
 0x11e   :  { %v241_v49 = vmul.f32 %v326_v48, %v237_v43  ;;  %v242_v50 = vmul.f32 %v326_v48, %v238_v44 }
 0x120   :  { %v282_v51 = vpack.c.bf16 %v242_v50, %v241_v49 }
 0x122   :  { %283 = vst [vmem:[%s413_s4] sm:$0xff] %v282_v51  }

// kernel: _lambda_.7
= control target key start
LH: loop header
LB: loop body
LE: loop exit
PB: predicated region body
PF: predicated region fallthrough
CT: control target
= control target key end

     0   :  { %9 = vsyncpa [#allocation4], 0  ;;  %s393_s15 = smov [#allocation3]   ;;  %s473_s0 = inlined_call_operand.vmem [shape: bf16[16,128], index: 0, kind: input, shape index: {}]   ;;  %s474_s1 = inlined_call_operand.hbm [shape: bf16[128,256], index: 1, kind: input, shape index: {}]   ;;  %s475_s2 = inlined_call_operand.vmem [shape: f32[1,256], index: 2, kind: input, shape index: {}]   ;;  %s476_s3 = inlined_call_operand.vmem [shape: f32[1,256], index: 3, kind: input, shape index: {}]   ;;  %s477_s4 = inlined_call_operand.vmem [shape: bf16[16,256], index: 4, kind: output, shape index: {}]  }
   0x1   :  { %s17_s16 = sshll.u32 %s393_s15, 4  ;;  %s369_s19 = scalar_lea.hbm %s474_s1, 2048  ;;  %s18_s16 = int_to_ptr.vmem [resolvable:$true] %s17_s16 }
   0x2   :  { %p370_p0 = scmp.ne.s32.totalorder %s474_s1, %s369_s19  ;;  %p373_p1 = scmp.lt.u32.totalorder %s369_s19, %s474_s1 }
   0x4   :  { %p375_p2 = pnand %p373_p1, %p370_p0 }
   0x6   :  { %378 = shalt.err (!%p375_p2)
}
   0x7   :  { %s379_s24 = scalar_lea.vmem %s18_s16, 2048  ;;  %p384_p4 = scmp.lt.s32.totalorder %s18_s16, %s18_s16 }
   0x8   :  { %p380_p3 = scmp.ne.s32.totalorder %s18_s16, %s379_s24  ;;  %p385_p5 = scmp.lt.s32.totalorder %s379_s24, %s379_s24 }
   0xa   :  { %p386_p6 = por %p385_p5, %p384_p4 }
   0xc   :  { %p387_p7 = pnand %p386_p6, %p380_p3 }
   0xe   :  { %390 = shalt.err (!%p387_p7)
}
   0xf   :  { %s394_s25 = smov 128   ;;  %s395_s26 = smov 8  }
  0x10   :  { %23 = dma.hbm_to_vmem [thread:$0]  %s474_s1, 2048, %s18_s16, [#allocation4], %s394_s25, %s394_s25, %s395_s26  }
  0x11   :  { %391 = dma.done.wait [#allocation4], 2048  }
  0x12   :  { %392 = vsyncadd [#allocation4], 4294965248  ;;  %v396_v0 = vmov 0   ;;  %v340_v1 = vld [vmem:[#allocation3 + $0x4] ss:$8 sps:$4 sm:$0xff]   ;;  %v364_v17 = vld [vmem:[%s473_s0] sm:$0xff]  }
  0x13   :  { %180 = vmatprep.mubr.bf16.mxu0 %v396_v0  ;;  %v342_v2 = vld [vmem:[#allocation3] ss:$8 sps:$4 sm:$0xff]   ;;  %148 = vmatprep.subr.bf16.mxu0 %v340_v1  ;;  %v343_v3 = vld [vmem:[#allocation3 + $0x14] ss:$8 sps:$4 sm:$0xff]   ;;  %v345_v4 = vld [vmem:[#allocation3 + $0x10] ss:$8 sps:$4 sm:$0xff]  }
  0x14   :  { %149 = vmatpush1.bf16.msra.mxu0 %v342_v2  ;;  %v346_v5 = vld [vmem:[#allocation3 + $0x24] ss:$8 sps:$4 sm:$0xff]   ;;  %v348_v6 = vld [vmem:[#allocation3 + $0x20] ss:$8 sps:$4 sm:$0xff]   ;;  %v349_v7 = vld [vmem:[#allocation3 + $0x34] ss:$8 sps:$4 sm:$0xff]  }
  0x15   :  { %150 = vmatprep.subr.bf16.mxu0 %v343_v3  ;;  %v351_v8 = vld [vmem:[#allocation3 + $0x30] ss:$8 sps:$4 sm:$0xff]   ;;  %v352_v9 = vld [vmem:[#allocation3 + $0x44] ss:$8 sps:$4 sm:$0xff]   ;;  %v354_v10 = vld [vmem:[#allocation3 + $0x40] ss:$8 sps:$4 sm:$0xff]   ;;  %v262_v3 = vlaneseq }
  0x16   :  { %v355_v11 = vld [vmem:[#allocation3 + $0x54] ss:$8 sps:$4 sm:$0xff]   ;;  %v357_v12 = vld [vmem:[#allocation3 + $0x50] ss:$8 sps:$4 sm:$0xff]   ;;  %v358_v13 = vld [vmem:[#allocation3 + $0x64] ss:$8 sps:$4 sm:$0xff]  }
  0x17   :  { %v360_v14 = vld [vmem:[#allocation3 + $0x60] ss:$8 sps:$4 sm:$0xff]   ;;  %v361_v15 = vld [vmem:[#allocation3 + $0x74] ss:$8 sps:$4 sm:$0xff]   ;;  %v363_v16 = vld [vmem:[#allocation3 + $0x70] ss:$8 sps:$4 sm:$0xff]  }
  0x18   :  { %151 = vmatpush1.bf16.msra.mxu0 %v345_v4 }
  0x19   :  { %152 = vmatprep.subr.bf16.mxu0 %v346_v5 }
  0x1c   :  { %153 = vmatpush1.bf16.msra.mxu0 %v348_v6 }
  0x1d   :  { %154 = vmatprep.subr.bf16.mxu0 %v349_v7  ;;  %v263_v7 = vshrl.u32 %v262_v3, 7 }
  0x20   :  { %155 = vmatpush1.bf16.msra.mxu0 %v351_v8  ;;  %v264_v8 = vsub.s32 0, %v263_v7 }
  0x21   :  { %156 = vmatprep.subr.bf16.mxu0 %v352_v9  ;;  %v260_v9 = vld [vmem:[%s475_s2] sm:$0x3] }
  0x24   :  { %157 = vmatpush1.bf16.msra.mxu0 %v354_v10  ;;  %v268_v10 = vsub.s32 1, %v263_v7 }
  0x25   :  { %158 = vmatprep.subr.bf16.mxu0 %v355_v11  ;;  %v276_v11 = vld [vmem:[%s476_s3] sm:$0x3] }
  0x28   :  { %159 = vmatpush1.bf16.msra.mxu0 %v357_v12  ;;  %v265_v12 = vrot.slane %v260_v9, %v264_v8 }
  0x29   :  { %160 = vmatprep.subr.bf16.mxu0 %v358_v13 }
  0x2c   :  { %161 = vmatpush1.bf16.msra.mxu0 %v360_v14  ;;  %v269_v14 = vrot.slane %v260_v9, %v268_v10 }
  0x2d   :  { %162 = vmatprep.subr.bf16.mxu0 %v361_v15 }
  0x30   :  { %163 = vmatpush1.bf16.msra.mxu0 %v363_v16 }
  0x33   :  { %181 = vmatmul.mubr.bf16.vlgmr.msra.gmra.mrb[0].mxu0 %v364_v17 }
 0x106   :  { %v437_v18 = vpop.f32.mrb[0].mxu0 }
 0x107   :  { %v439_v19 = vpop.f32.mrb[1].mxu0  ;;  %v222_v21 = vmul.f32 %v437_v18, %v437_v18 }
 0x108   :  { %v441_v20 = vpop.f32.mrb[2].mxu0  ;;  %v223_v25 = vmul.f32 %v439_v19, %v439_v19 }
 0x109   :  { %v206_v22 = vadd.f32 %v441_v20, %v437_v18  ;;  %v224_v23 = vmul.f32 %v441_v20, %v441_v20  ;;  %v449_v24 = vpop.f32.mrb[3].mxu0 }
 0x10a   :  { %v213_v26 = vadd.f32 %v449_v24, %v439_v19  ;;  %v225_v27 = vmul.f32 %v449_v24, %v449_v24 }
 0x10b   :  { %v207_v28 = vrot.slane %v206_v22, 4  ;;  %v226_v29 = vadd.f32 %v224_v23, %v222_v21  ;;  %v285_v21 = vrot.slane %v276_v11, %v268_v10 }
 0x10c   :  { %v214_v30 = vrot.slane %v213_v26, 4  ;;  %v233_v31 = vadd.f32 %v225_v27, %v223_v25 }
 0x10d   :  { %v208_v32 = vadd.f32 %v207_v28, %v206_v22  ;;  %v227_v33 = vrot.slane %v226_v29, 4 }
 0x10e   :  { %v215_v34 = vadd.f32 %v214_v30, %v213_v26  ;;  %v234_v35 = vrot.slane %v233_v31, 4 }
 0x10f   :  { %v209_v36 = vrot.slane %v208_v32, 2  ;;  %v228_v37 = vadd.f32 %v227_v33, %v226_v29 }
 0x110   :  { %v216_v38 = vrot.slane %v215_v34, 2  ;;  %v235_v39 = vadd.f32 %v234_v35, %v233_v31 }
 0x111   :  { %v210_v40 = vadd.f32 %v209_v36, %v208_v32  ;;  %v229_v41 = vrot.slane %v228_v37, 2 }
 0x112   :  { %v217_v42 = vadd.f32 %v216_v38, %v215_v34  ;;  %v236_v43 = vrot.slane %v235_v39, 2 }
 0x113   :  { %v211_v44 = vrot.slane %v210_v40, 1  ;;  %v230_v45 = vadd.f32 %v229_v41, %v228_v37 }
 0x114   :  { %v218_v46 = vrot.slane %v217_v42, 1  ;;  %v237_v47 = vadd.f32 %v236_v43, %v235_v39 }
 0x115   :  { %v212_v48 = vadd.f32 %v211_v44, %v210_v40  ;;  %v231_v49 = vrot.slane %v230_v45, 1 }
 0x116   :  { %v219_v50 = vadd.f32 %v218_v46, %v217_v42  ;;  %v238_v51 = vrot.slane %v237_v47, 1 }
 0x117   :  { %v220_v52 = vmul.f32 0.0625, %v212_v48  ;;  %v232_v53 = vadd.f32 %v231_v49, %v230_v45 }
 0x118   :  { %v221_v54 = vmul.f32 0.0625, %v219_v50  ;;  %v239_v55 = vadd.f32 %v238_v51, %v237_v47 }
 0x119   :  { %v240_v56 = vmul.f32 0.0625, %v232_v53  ;;  %v242_v57 = vmul.f32 %v220_v52, %v220_v52  ;;  %v248_v58 = vsub.f32 %v437_v18, %v220_v52  ;;  %v250_v59 = vsub.f32 %v441_v20, %v220_v52 }
 0x11a   :  { %v241_v60 = vmul.f32 0.0625, %v239_v55  ;;  %v243_v61 = vmul.f32 %v221_v54, %v221_v54  ;;  %v249_v62 = vsub.f32 %v439_v19, %v221_v54  ;;  %v251_v63 = vsub.f32 %v449_v24, %v221_v54 }
 0x11b   :  { %v244_v0 = vsub.f32 %v240_v56, %v242_v57  ;;  %v281_v18 = vrot.slane %v276_v11, %v264_v8 }
 0x11c   :  { %v245_v1 = vsub.f32 %v241_v60, %v243_v61 }
 0x11d   :  { %v246_v2 = vmax.f32 %v244_v0, 0.0 }
 0x11e   :  { %v247_v4 = vmax.f32 %v245_v1, 0.0 }
 0x11f   :  { %v252_v5 = vadd.f32 1e-05, %v246_v2 }
 0x120   :  { %v253_v6 = vadd.f32 1e-05, %v247_v4 }
 0x121   :  { %365 = vrsqrt.f32 %v252_v5 }
 0x122   :  { %367 = vrsqrt.f32 %v253_v6 }
 0x12b   :  { %v366_v13 = vpop.eup %365 }
 0x12c   :  { %v368_v15 = vpop.eup %367  ;;  %v256_v16 = vmul.f32 %v366_v13, %v248_v58  ;;  %v258_v17 = vmul.f32 %v366_v13, %v250_v59 }
 0x12d   :  { %v257_v19 = vmul.f32 %v368_v15, %v249_v62  ;;  %v259_v20 = vmul.f32 %v368_v15, %v251_v63 }
 0x12e   :  { %v272_v22 = vmul.f32 %v265_v12, %v256_v16  ;;  %v274_v23 = vmul.f32 %v265_v12, %v258_v17 }
 0x12f   :  { %v273_v24 = vmul.f32 %v269_v14, %v257_v19  ;;  %v275_v25 = vmul.f32 %v269_v14, %v259_v20 }
 0x130   :  { %v288_v26 = vadd.f32 %v281_v18, %v272_v22  ;;  %v290_v27 = vadd.f32 %v281_v18, %v274_v23 }
 0x131   :  { %v289_v28 = vadd.f32 %v285_v21, %v273_v24  ;;  %v291_v29 = vadd.f32 %v285_v21, %v275_v25 }
 0x132   :  { %v292_v30 = vmax.f32 %v288_v26, 0.0  ;;  %v294_v31 = vmax.f32 %v290_v27, 0.0 }
 0x133   :  { %v293_v32 = vmax.f32 %v289_v28, 0.0  ;;  %v295_v33 = vmax.f32 %v291_v29, 0.0 }
 0x135   :  { %v334_v34 = vpack.c.bf16 %v293_v32, %v292_v30  ;;  %v335_v35 = vpack.c.bf16 %v295_v33, %v294_v31 }
 0x137   :  { %308 = vst [vmem:[%s477_s4] sm:$0xff] %v334_v34  ;;  %309 = vst [vmem:[%s477_s4 + $0x8] sm:$0xff] %v335_v35 }
 0x138   :  { %314 = vsyncpa [#allocation4], 1 }

// kernel: _lambda_.11
= control target key start
LH: loop header
LB: loop body
LE: loop exit
PB: predicated region body
PF: predicated region fallthrough
CT: control target
= control target key end

     0   :  { %s655_s1 = inlined_call_operand.vmem [shape: bf16[256,256], index: 1, kind: input, shape index: {}]   ;;  %s656_s0 = inlined_call_operand.vmem [shape: bf16[16,256], index: 0, kind: input, shape index: {}]   ;;  %s657_s2 = inlined_call_operand.vmem [shape: f32[1,256], index: 2, kind: input, shape index: {}]   ;;  %s658_s3 = inlined_call_operand.vmem [shape: f32[1,256], index: 3, kind: input, shape index: {}]   ;;  %s659_s4 = inlined_call_operand.vmem [shape: bf16[16,256], index: 4, kind: output, shape index: {}]  }
   0x1   :  { %v437_v0 = vld [vmem:[%s655_s1 + $0x4] ss:$8 sps:$4 sm:$0xff]   ;;  %v439_v1 = vld [vmem:[%s655_s1] ss:$8 sps:$4 sm:$0xff]   ;;  %v440_v2 = vld [vmem:[%s655_s1 + $0x14] ss:$8 sps:$4 sm:$0xff]  }
   0x2   :  { %233 = vmatprep.subr.bf16.mxu0 %v437_v0  ;;  %v442_v3 = vld [vmem:[%s655_s1 + $0x10] ss:$8 sps:$4 sm:$0xff]   ;;  %v443_v4 = vld [vmem:[%s655_s1 + $0x24] ss:$8 sps:$4 sm:$0xff]   ;;  %v445_v5 = vld [vmem:[%s655_s1 + $0x20] ss:$8 sps:$4 sm:$0xff]  }
   0x3   :  { %234 = vmatpush1.bf16.msra.mxu0 %v439_v1  ;;  %v446_v6 = vld [vmem:[%s655_s1 + $0x34] ss:$8 sps:$4 sm:$0xff]   ;;  %v448_v7 = vld [vmem:[%s655_s1 + $0x30] ss:$8 sps:$4 sm:$0xff]   ;;  %v449_v8 = vld [vmem:[%s655_s1 + $0x44] ss:$8 sps:$4 sm:$0xff]  }
   0x4   :  { %235 = vmatprep.subr.bf16.mxu0 %v440_v2  ;;  %v451_v9 = vld [vmem:[%s655_s1 + $0x40] ss:$8 sps:$4 sm:$0xff]   ;;  %v452_v10 = vld [vmem:[%s655_s1 + $0x54] ss:$8 sps:$4 sm:$0xff]   ;;  %v454_v11 = vld [vmem:[%s655_s1 + $0x50] ss:$8 sps:$4 sm:$0xff]  }
   0x5   :  { %v455_v12 = vld [vmem:[%s655_s1 + $0x64] ss:$8 sps:$4 sm:$0xff]   ;;  %v457_v14 = vld [vmem:[%s655_s1 + $0x60] ss:$8 sps:$4 sm:$0xff]   ;;  %v458_v15 = vld [vmem:[%s655_s1 + $0x74] ss:$8 sps:$4 sm:$0xff]  }
   0x6   :  { %v487_v13 = vld [vmem:[%s656_s0 + $0x4] ss:$8 sps:$4 sm:$0xff]   ;;  %v460_v16 = vld [vmem:[%s655_s1 + $0x70] ss:$8 sps:$4 sm:$0xff]   ;;  %v463_v18 = vld [vmem:[%s655_s1 + $0x80] ss:$8 sps:$4 sm:$0xff]  }
   0x7   :  { %236 = vmatpush1.bf16.msra.mxu0 %v442_v3  ;;  %265 = vmatprep.mubr.bf16.mxu0 %v487_v13  ;;  %v461_v17 = vld [vmem:[%s655_s1 + $0x84] ss:$8 sps:$4 sm:$0xff]   ;;  %v464_v19 = vld [vmem:[%s655_s1 + $0x94] ss:$8 sps:$4 sm:$0xff]   ;;  %v466_v20 = vld [vmem:[%s655_s1 + $0x90] ss:$8 sps:$4 sm:$0xff]  }
   0x8   :  { %237 = vmatprep.subr.bf16.mxu0 %v443_v4  ;;  %v467_v21 = vld [vmem:[%s655_s1 + $0xa4] ss:$8 sps:$4 sm:$0xff]   ;;  %v469_v22 = vld [vmem:[%s655_s1 + $0xa0] ss:$8 sps:$4 sm:$0xff]   ;;  %v470_v23 = vld [vmem:[%s655_s1 + $0xb4] ss:$8 sps:$4 sm:$0xff]  }
   0x9   :  { %v472_v24 = vld [vmem:[%s655_s1 + $0xb0] ss:$8 sps:$4 sm:$0xff]   ;;  %v473_v25 = vld [vmem:[%s655_s1 + $0xc4] ss:$8 sps:$4 sm:$0xff]   ;;  %v475_v26 = vld [vmem:[%s655_s1 + $0xc0] ss:$8 sps:$4 sm:$0xff]  }
   0xa   :  { %v476_v27 = vld [vmem:[%s655_s1 + $0xd4] ss:$8 sps:$4 sm:$0xff]   ;;  %v478_v28 = vld [vmem:[%s655_s1 + $0xd0] ss:$8 sps:$4 sm:$0xff]   ;;  %v479_v29 = vld [vmem:[%s655_s1 + $0xe4] ss:$8 sps:$4 sm:$0xff]  }
   0xb   :  { %238 = vmatpush1.bf16.msra.mxu0 %v445_v5  ;;  %v481_v30 = vld [vmem:[%s655_s1 + $0xe0] ss:$8 sps:$4 sm:$0xff]   ;;  %v482_v31 = vld [vmem:[%s655_s1 + $0xf4] ss:$8 sps:$4 sm:$0xff]   ;;  %v484_v32 = vld [vmem:[%s655_s1 + $0xf0] ss:$8 sps:$4 sm:$0xff]  }
   0xc   :  { %239 = vmatprep.subr.bf16.mxu0 %v446_v6  ;;  %v485_v33 = vld [vmem:[%s656_s0] ss:$8 sps:$4 sm:$0xff]  }
   0xf   :  { %240 = vmatpush1.bf16.msra.mxu0 %v448_v7 }
  0x10   :  { %241 = vmatprep.subr.bf16.mxu0 %v449_v8 }
  0x13   :  { %242 = vmatpush1.bf16.msra.mxu0 %v451_v9 }
  0x14   :  { %243 = vmatprep.subr.bf16.mxu0 %v452_v10 }
  0x17   :  { %244 = vmatpush1.bf16.msra.mxu0 %v454_v11 }
  0x18   :  { %245 = vmatprep.subr.bf16.mxu0 %v455_v12 }
  0x1b   :  { %246 = vmatpush1.bf16.msra.mxu0 %v457_v14 }
  0x1c   :  { %247 = vmatprep.subr.bf16.mxu0 %v458_v15 }
  0x1f   :  { %248 = vmatpush1.bf16.msra.mxu0 %v460_v16 }
  0x20   :  { %249 = vmatprep.subr.bf16.mxu0 %v461_v17 }
  0x23   :  { %250 = vmatpush1.bf16.msra.mxu0 %v463_v18 }
  0x24   :  { %251 = vmatprep.subr.bf16.mxu0 %v464_v19  ;;  %v347_v19 = vlaneseq }
  0x27   :  { %252 = vmatpush1.bf16.msra.mxu0 %v466_v20 }
  0x28   :  { %253 = vmatprep.subr.bf16.mxu0 %v467_v21 }
  0x2b   :  { %254 = vmatpush1.bf16.msra.mxu0 %v469_v22 }
  0x2c   :  { %255 = vmatprep.subr.bf16.mxu0 %v470_v23  ;;  %v348_v23 = vshrl.u32 %v347_v19, 7 }
  0x2f   :  { %256 = vmatpush1.bf16.msra.mxu0 %v472_v24  ;;  %v349_v24 = vsub.s32 0, %v348_v23 }
  0x30   :  { %257 = vmatprep.subr.bf16.mxu0 %v473_v25  ;;  %v345_v25 = vld [vmem:[%s657_s2] sm:$0x3] }
  0x33   :  { %258 = vmatpush1.bf16.msra.mxu0 %v475_v26  ;;  %v353_v26 = vsub.s32 1, %v348_v23 }
  0x34   :  { %259 = vmatprep.subr.bf16.mxu0 %v476_v27  ;;  %v361_v27 = vld [vmem:[%s658_s3] sm:$0x3] }
  0x37   :  { %260 = vmatpush1.bf16.msra.mxu0 %v478_v28  ;;  %v350_v28 = vrot.slane %v345_v25, %v349_v24 }
  0x38   :  { %261 = vmatprep.subr.bf16.mxu0 %v479_v29 }
  0x3b   :  { %262 = vmatpush1.bf16.msra.mxu0 %v481_v30  ;;  %v354_v30 = vrot.slane %v345_v25, %v353_v26 }
  0x3c   :  { %263 = vmatprep.subr.bf16.mxu0 %v482_v31 }
  0x3f   :  { %264 = vmatpush1.bf16.msra.mxu0 %v484_v32 }
  0x42   :  { %266 = vmatmul.mubr.bf16.vlgmr.msra.gmra.mrb[0].mxu0 %v485_v33 }
 0x115   :  { %v619_v34 = vpop.f32.mrb[0].mxu0 }
 0x116   :  { %v621_v35 = vpop.f32.mrb[1].mxu0  ;;  %v307_v37 = vmul.f32 %v619_v34, %v619_v34 }
 0x117   :  { %v623_v36 = vpop.f32.mrb[2].mxu0  ;;  %v308_v41 = vmul.f32 %v621_v35, %v621_v35 }
 0x118   :  { %v291_v38 = vadd.f32 %v623_v36, %v619_v34  ;;  %v309_v39 = vmul.f32 %v623_v36, %v623_v36  ;;  %v631_v40 = vpop.f32.mrb[3].mxu0 }
 0x119   :  { %v298_v42 = vadd.f32 %v631_v40, %v621_v35  ;;  %v310_v43 = vmul.f32 %v631_v40, %v631_v40 }
 0x11a   :  { %v292_v44 = vrot.slane %v291_v38, 4  ;;  %v311_v45 = vadd.f32 %v309_v39, %v307_v37  ;;  %v370_v37 = vrot.slane %v361_v27, %v353_v26 }
 0x11b   :  { %v299_v46 = vrot.slane %v298_v42, 4  ;;  %v318_v47 = vadd.f32 %v310_v43, %v308_v41 }
 0x11c   :  { %v293_v48 = vadd.f32 %v292_v44, %v291_v38  ;;  %v312_v49 = vrot.slane %v311_v45, 4 }
 0x11d   :  { %v300_v50 = vadd.f32 %v299_v46, %v298_v42  ;;  %v319_v51 = vrot.slane %v318_v47, 4 }
 0x11e   :  { %v294_v52 = vrot.slane %v293_v48, 2  ;;  %v313_v53 = vadd.f32 %v312_v49, %v311_v45 }
 0x11f   :  { %v301_v54 = vrot.slane %v300_v50, 2  ;;  %v320_v55 = vadd.f32 %v319_v51, %v318_v47 }
 0x120   :  { %v295_v56 = vadd.f32 %v294_v52, %v293_v48  ;;  %v314_v57 = vrot.slane %v313_v53, 2 }
 0x121   :  { %v302_v58 = vadd.f32 %v301_v54, %v300_v50  ;;  %v321_v59 = vrot.slane %v320_v55, 2 }
 0x122   :  { %v296_v60 = vrot.slane %v295_v56, 1  ;;  %v315_v61 = vadd.f32 %v314_v57, %v313_v53 }
 0x123   :  { %v303_v62 = vrot.slane %v302_v58, 1  ;;  %v322_v63 = vadd.f32 %v321_v59, %v320_v55 }
 0x124   :  { %v297_v0 = vadd.f32 %v296_v60, %v295_v56  ;;  %v316_v1 = vrot.slane %v315_v61, 1 }
 0x125   :  { %v304_v2 = vadd.f32 %v303_v62, %v302_v58  ;;  %v323_v3 = vrot.slane %v322_v63, 1 }
 0x126   :  { %v305_v4 = vmul.f32 0.0625, %v297_v0  ;;  %v317_v5 = vadd.f32 %v316_v1, %v315_v61 }
 0x127   :  { %v306_v6 = vmul.f32 0.0625, %v304_v2  ;;  %v324_v7 = vadd.f32 %v323_v3, %v322_v63 }
 0x128   :  { %v325_v8 = vmul.f32 0.0625, %v317_v5  ;;  %v327_v9 = vmul.f32 %v305_v4, %v305_v4  ;;  %v333_v10 = vsub.f32 %v619_v34, %v305_v4  ;;  %v335_v11 = vsub.f32 %v623_v36, %v305_v4 }
 0x129   :  { %v326_v12 = vmul.f32 0.0625, %v324_v7  ;;  %v328_v13 = vmul.f32 %v306_v6, %v306_v6  ;;  %v334_v14 = vsub.f32 %v621_v35, %v306_v6  ;;  %v336_v15 = vsub.f32 %v631_v40, %v306_v6 }
 0x12a   :  { %v329_v16 = vsub.f32 %v325_v8, %v327_v9  ;;  %v366_v34 = vrot.slane %v361_v27, %v349_v24 }
 0x12b   :  { %v330_v17 = vsub.f32 %v326_v12, %v328_v13 }
 0x12c   :  { %v331_v18 = vmax.f32 %v329_v16, 0.0 }
 0x12d   :  { %v332_v20 = vmax.f32 %v330_v17, 0.0 }
 0x12e   :  { %v337_v21 = vadd.f32 1e-05, %v331_v18 }
 0x12f   :  { %v338_v22 = vadd.f32 1e-05, %v332_v20 }
 0x130   :  { %488 = vrsqrt.f32 %v337_v21 }
 0x131   :  { %490 = vrsqrt.f32 %v338_v22 }
 0x13a   :  { %v489_v29 = vpop.eup %488 }
 0x13b   :  { %v491_v31 = vpop.eup %490  ;;  %v341_v32 = vmul.f32 %v489_v29, %v333_v10  ;;  %v343_v33 = vmul.f32 %v489_v29, %v335_v11 }
 0x13c   :  { %v342_v35 = vmul.f32 %v491_v31, %v334_v14  ;;  %v344_v36 = vmul.f32 %v491_v31, %v336_v15 }
 0x13d   :  { %v357_v38 = vmul.f32 %v350_v28, %v341_v32  ;;  %v359_v39 = vmul.f32 %v350_v28, %v343_v33 }
 0x13e   :  { %v358_v40 = vmul.f32 %v354_v30, %v342_v35  ;;  %v360_v41 = vmul.f32 %v354_v30, %v344_v36 }
 0x13f   :  { %v373_v42 = vadd.f32 %v366_v34, %v357_v38  ;;  %v375_v43 = vadd.f32 %v366_v34, %v359_v39 }
 0x140   :  { %v374_v44 = vadd.f32 %v370_v37, %v358_v40  ;;  %v376_v45 = vadd.f32 %v370_v37, %v360_v41 }
 0x141   :  { %v377_v46 = vmax.f32 %v373_v42, 0.0  ;;  %v379_v47 = vmax.f32 %v375_v43, 0.0 }
 0x142   :  { %v378_v48 = vmax.f32 %v374_v44, 0.0  ;;  %v380_v49 = vmax.f32 %v376_v45, 0.0 }
 0x144   :  { %v435_v50 = vpack.c.bf16 %v378_v48, %v377_v46  ;;  %v436_v51 = vpack.c.bf16 %v380_v49, %v379_v47 }
 0x146   :  { %393 = vst [vmem:[%s659_s4] sm:$0xff] %v435_v50  ;;  %394 = vst [vmem:[%s659_s4 + $0x8] sm:$0xff] %v436_v51 }

// kernel: _lambda_.13
= control target key start
LH: loop header
LB: loop body
LE: loop exit
PB: predicated region body
PF: predicated region fallthrough
CT: control target
= control target key end

     0   :  { %s699_s0 = inlined_call_operand.vmem [shape: bf16[16,128], index: 0, kind: input, shape index: {}]   ;;  %s700_s1 = inlined_call_operand.vmem [shape: bf16[16,128], index: 1, kind: input, shape index: {}]   ;;  %s701_s2 = inlined_call_operand.hbm [shape: f32[1,1], index: 2, kind: output, shape index: {}]  }
   0x1   :  { %v483_v0 = vld [vmem:[%s699_s0] sm:$0xff]  }
   0x2   :  { %v484_v1 = vld [vmem:[%s700_s1] sm:$0xff]   ;;  %29 = vxpose.xlu0.c.b16.start.end [1/1] (short) %v483_v0, 128 }
   0x3   :  { %7 = vsyncpa [#allocation3], 0  ;;  %454 = vmatprep.subr.bf16.mxu0 %v484_v1  ;;  %472 = vmatprep.subr.bf16.mxu1 %v484_v1  ;;  %vm51_vm0 = vcmask 130048   ;;  %v238_v10 = vlaneseq  ;;  %s485_s20 = scalar_lea.hbm %s701_s2, 16 }
   0x4   :  { %455 = vmatpush3.bf16.msra.mxu0 %v484_v1  ;;  %473 = vmatpush3.bf16.msra.mxu1 %v484_v1  ;;  %p486_p0 = scmp.ne.s32.totalorder %s701_s2, %s485_s20  ;;  %p489_p1 = scmp.lt.u32.totalorder %s485_s20, %s701_s2 }
   0x5   :  { %v527_v11 = vshrl.u32 %v238_v10, 7  ;;  %v532_v13 = vand.u32 127, %v238_v10 }
   0x6   :  { %p491_p2 = pnand %p489_p1, %p486_p0 }
   0x7   :  { %v530_v12 = vadd.s32 16, %v527_v11  ;;  %v240_v14 = vadd.s32 8, %v527_v11  ;;  %v536_v15 = vadd.s32 24, %v527_v11  ;;  %vm257_vm2 = vcmp.eq.s32.totalorder %v527_v11, %v532_v13 }
   0x8   :  { %v544_v17 = vadd.s32 48, %v527_v11  ;;  %v547_v18 = vadd.s32 32, %v527_v11  ;;  %v552_v21 = vadd.s32 56, %v527_v11  ;;  %v555_v22 = vadd.s32 40, %v527_v11 }
   0x9   :  { %vm259_vm1 = vcmp.eq.s32.totalorder %v530_v12, %v532_v13  ;;  %vm258_vm3 = vcmp.eq.s32.totalorder %v240_v14, %v532_v13  ;;  %vm260_vm4 = vcmp.eq.s32.totalorder %v536_v15, %v532_v13  ;;  %v558_v23 = vadd.s32 80, %v527_v11 }
   0xa   :  { %v561_v26 = vadd.s32 64, %v527_v11  ;;  %v564_v27 = vadd.s32 88, %v527_v11  ;;  %v567_v28 = vadd.s32 72, %v527_v11  ;;  %v570_v33 = vadd.s32 96, %v527_v11 }
   0xb   :  { %vm261_vm5 = vcmp.eq.s32.totalorder %v547_v18, %v532_v13  ;;  %v575_v40 = vadd.s32 112, %v527_v11  ;;  %v578_v41 = vadd.s32 120, %v527_v11  ;;  %v581_v45 = vadd.s32 104, %v527_v11 }
   0xc   :  { %vm263_vm6 = vcmp.eq.s32.totalorder %v544_v17, %v532_v13  ;;  %vm264_vm7 = vcmp.eq.s32.totalorder %v552_v21, %v532_v13  ;;  %vm262_vm8 = vcmp.eq.s32.totalorder %v555_v22, %v532_v13  ;;  %vm265_vm9 = vcmp.eq.s32.totalorder %v561_v26, %v532_v13 }
   0xd   :  { %vm267_vm10 = vcmp.eq.s32.totalorder %v558_v23, %v532_v13  ;;  %vm266_vm11 = vcmp.eq.s32.totalorder %v567_v28, %v532_v13  ;;  %vm268_vm12 = vcmp.eq.s32.totalorder %v564_v27, %v532_v13  ;;  %vm269_vm13 = vcmp.eq.s32.totalorder %v570_v33, %v532_v13 }
   0xe   :  { %vm270_vm14 = vcmp.eq.s32.totalorder %v581_v45, %v532_v13  ;;  %vm271_vm15 = vcmp.eq.s32.totalorder %v575_v40, %v532_v13 }
  0x68   :  { %v37_v2 = vpop.trf.xlu0 }
  0x69   :  { %456 = vmatprep.mubr.msk.bf16.mxu0 %vm51_vm0, %v37_v2 }
  0x6c   :  { %v38_v3 = vpop.trf.xlu0 }
  0x6d   :  { %457 = vmatmul.mubr.msk.bf16.vlgmr.msra.gmra.mrb[0].mxu0 %vm51_vm0, %v38_v3 }
  0x70   :  { %v39_v4 = vpop.trf.xlu0 }
  0x71   :  { %460 = vmatprep.mubr.msk.bf16.mxu0 %vm51_vm0, %v39_v4 }
  0x74   :  { %v40_v5 = vpop.trf.xlu0 }
  0x75   :  { %461 = vmatmul.mubr.msk.bf16.gmra.mrb[4].mxu0 %vm51_vm0, %v40_v5 }
  0x78   :  { %v41_v6 = vpop.trf.xlu0 }
  0x79   :  { %464 = vmatprep.mubr.msk.bf16.mxu1 %vm51_vm0, %v41_v6 }
  0x7c   :  { %v42_v7 = vpop.trf.xlu0 }
  0x7d   :  { %465 = vmatmul.mubr.msk.bf16.vlgmr.msra.gmra.mrb[0].mxu1 %vm51_vm0, %v42_v7 }
  0x80   :  { %v43_v8 = vpop.trf.xlu0 }
  0x81   :  { %468 = vmatprep.mubr.msk.bf16.mxu1 %vm51_vm0, %v43_v8 }
  0x84   :  { %v44_v9 = vpop.trf.xlu0 }
  0x85   :  { %469 = vmatmul.mubr.msk.bf16.gmra.mrb[4].mxu1 %vm51_vm0, %v44_v9  ;;  %vm272_vm0 = vcmp.eq.s32.totalorder %v578_v41, %v532_v13 }
 0x140   :  { %v458_v16 = vpop.f32.mrb[0].mxu0 }
 0x141   :  { %v224_v19 = vmul.f32 0.0625, %v458_v16  ;;  %v110_v20 = vpop.f32.mrb[1].mxu0  ;;  %v176_v42 = vmul.f32 %v458_v16, %v458_v16 }
 0x142   :  { %v222_v24 = vmul.f32 0.0625, %v110_v20  ;;  %v459_v25 = vpop.f32.mrb[2].mxu0  ;;  %v174_v30 = vmul.f32 %v110_v20, %v110_v20 }
 0x143   :  { %v275_v29 = vmul.f32 %v224_v19, %v224_v19  ;;  %v225_v31 = vmul.f32 0.0625, %v459_v25  ;;  %v113_v32 = vpop.f32.mrb[3].mxu0  ;;  %v431_v38 = vadd.f32 -1.0, %v224_v19  ;;  %v177_v48 = vmul.f32 %v459_v25, %v459_v25 }
 0x144   :  { %v273_v34 = vmul.f32 %v222_v24, %v222_v24  ;;  %v429_v35 = vadd.f32 -1.0, %v222_v24  ;;  %v175_v36 = vmul.f32 %v113_v32, %v113_v32  ;;  %v223_v37 = vmul.f32 0.0625, %v113_v32 }
 0x145   :  { %v432_v39 = vadd.f32 -1.0, %v225_v31  ;;  %v291_v46 = vsel %vm259_vm1, %v275_v29, 0.0  ;;  %v276_v51 = vmul.f32 %v225_v31, %v225_v31  ;;  %v347_v55 = vmul.f32 %v431_v38, %v431_v38 }
 0x146   :  { %v190_v43 = vadd.f32 %v175_v36, %v174_v30  ;;  %v274_v44 = vmul.f32 %v223_v37, %v223_v37  ;;  %v345_v47 = vmul.f32 %v429_v35, %v429_v35  ;;  %v430_v49 = vadd.f32 -1.0, %v223_v37 }
 0x147   :  { %v289_v50 = vsel %vm257_vm2, %v273_v34, 0.0  ;;  %v348_v56 = vmul.f32 %v432_v39, %v432_v39  ;;  %v292_v6 = vsel %vm260_vm4, %v276_v51, 0.0  ;;  %v363_v10 = vsel %vm259_vm1, %v347_v55, 0.0 }
 0x148   :  { %v191_v52 = vadd.f32 %v190_v43, %v176_v42  ;;  %v290_v53 = vsel %vm258_vm3, %v274_v44, 0.0  ;;  %v462_v54 = vpop.f32.mrb[4].mxu0  ;;  %v346_v58 = vmul.f32 %v430_v49, %v430_v49  ;;  %v361_v1 = vsel %vm257_vm2, %v345_v47, 0.0 }
 0x149   :  { %v305_v57 = vadd.f32 %v290_v53, %v289_v50  ;;  %v126_v59 = vpop.f32.mrb[5].mxu0  ;;  %v228_v60 = vmul.f32 0.0625, %v462_v54  ;;  %v364_v14 = vsel %vm260_vm4, %v348_v56, 0.0  ;;  %v180_v24 = vmul.f32 %v462_v54, %v462_v54 }
 0x14a   :  { %v178_v61 = vmul.f32 %v126_v59, %v126_v59  ;;  %v192_v62 = vadd.f32 %v191_v52, %v177_v48  ;;  %v226_v63 = vmul.f32 0.0625, %v126_v59  ;;  %v463_v0 = vpop.f32.mrb[6].mxu0  ;;  %v362_v3 = vsel %vm258_vm3, %v346_v58, 0.0 }
 0x14b   :  { %v306_v2 = vadd.f32 %v305_v57, %v291_v46  ;;  %v229_v4 = vmul.f32 0.0625, %v463_v0  ;;  %v129_v5 = vpop.f32.mrb[7].mxu0  ;;  %v377_v7 = vadd.f32 %v362_v3, %v361_v1  ;;  %v435_v8 = vadd.f32 -1.0, %v228_v60 }
 0x14c   :  { %v193_v9 = vadd.f32 %v192_v62, %v178_v61  ;;  %v277_v16 = vmul.f32 %v226_v63, %v226_v63  ;;  %v433_v19 = vadd.f32 -1.0, %v226_v63  ;;  %v279_v29 = vmul.f32 %v228_v60, %v228_v60 }
 0x14d   :  { %v307_v11 = vadd.f32 %v306_v2, %v292_v6  ;;  %v378_v20 = vadd.f32 %v377_v7, %v363_v10  ;;  %v436_v25 = vadd.f32 -1.0, %v229_v4  ;;  %v179_v31 = vmul.f32 %v129_v5, %v129_v5 }
 0x14e   :  { %v293_v30 = vsel %vm261_vm5, %v277_v16, 0.0  ;;  %v349_v12 = vmul.f32 %v433_v19, %v433_v19  ;;  %v351_v32 = vmul.f32 %v435_v8, %v435_v8  ;;  %v280_v36 = vmul.f32 %v229_v4, %v229_v4 }
 0x14f   :  { %v308_v34 = vadd.f32 %v307_v11, %v293_v30  ;;  %v379_v35 = vadd.f32 %v378_v20, %v364_v14  ;;  %v181_v38 = vmul.f32 %v463_v0, %v463_v0  ;;  %v194_v39 = vadd.f32 %v193_v9, %v179_v31 }
 0x150   :  { %v466_v37 = vpop.f32.mrb[0].mxu1  ;;  %v365_v15 = vsel %vm261_vm5, %v349_v12, 0.0  ;;  %v227_v42 = vmul.f32 0.0625, %v129_v5  ;;  %v352_v46 = vmul.f32 %v436_v25, %v436_v25  ;;  %v295_v54 = vsel %vm263_vm6, %v279_v29, 0.0 }
 0x151   :  { %v142_v43 = vpop.f32.mrb[1].mxu1  ;;  %v380_v44 = vadd.f32 %v379_v35, %v365_v15  ;;  %v232_v47 = vmul.f32 0.0625, %v466_v37  ;;  %v195_v50 = vadd.f32 %v194_v39, %v180_v24  ;;  %v367_v55 = vsel %vm263_vm6, %v351_v32, 0.0 }
 0x152   :  { %v182_v48 = vmul.f32 %v142_v43, %v142_v43  ;;  %v467_v49 = vpop.f32.mrb[2].mxu1  ;;  %v278_v51 = vmul.f32 %v227_v42, %v227_v42  ;;  %v434_v52 = vadd.f32 -1.0, %v227_v42  ;;  %v230_v18 = vmul.f32 0.0625, %v142_v43 }
 0x153   :  { %v145_v53 = vpop.f32.mrb[3].mxu1  ;;  %v296_v56 = vsel %vm264_vm7, %v280_v36, 0.0  ;;  %v439_v57 = vadd.f32 -1.0, %v232_v47  ;;  %v196_v60 = vadd.f32 %v195_v50, %v181_v38  ;;  %v184_v63 = vmul.f32 %v466_v37, %v466_v37 }
 0x154   :  { %v294_v58 = vsel %vm262_vm8, %v278_v51, 0.0  ;;  %v350_v59 = vmul.f32 %v434_v52, %v434_v52  ;;  %v281_v61 = vmul.f32 %v230_v18, %v230_v18  ;;  %v437_v0 = vadd.f32 -1.0, %v230_v18 }
 0x155   :  { %v309_v62 = vadd.f32 %v308_v34, %v294_v58  ;;  %v233_v17 = vmul.f32 0.0625, %v467_v49  ;;  %v368_v1 = vsel %vm264_vm7, %v352_v46, 0.0  ;;  %v283_v3 = vmul.f32 %v232_v47, %v232_v47 }
 0x156   :  { %v366_v2 = vsel %vm262_vm8, %v350_v59, 0.0  ;;  %v197_v4 = vadd.f32 %v196_v60, %v182_v48  ;;  %v355_v7 = vmul.f32 %v439_v57, %v439_v57  ;;  %v353_v8 = vmul.f32 %v437_v0, %v437_v0 }
 0x157   :  { %v310_v5 = vadd.f32 %v309_v62, %v295_v54  ;;  %v381_v6 = vadd.f32 %v380_v44, %v366_v2  ;;  %v297_v10 = vsel %vm265_vm9, %v281_v61, 0.0  ;;  %v185_v16 = vmul.f32 %v467_v49, %v467_v49 }
 0x158   :  { %v470_v9 = vpop.f32.mrb[4].mxu1  ;;  %v183_v11 = vmul.f32 %v145_v53, %v145_v53  ;;  %v231_v19 = vmul.f32 0.0625, %v145_v53  ;;  %v284_v20 = vmul.f32 %v233_v17, %v233_v17  ;;  %v440_v24 = vadd.f32 -1.0, %v233_v17 }
 0x159   :  { %v158_v21 = vpop.f32.mrb[5].mxu1  ;;  %v382_v22 = vadd.f32 %v381_v6, %v367_v55  ;;  %v311_v14 = vadd.f32 %v310_v5, %v296_v56  ;;  %v369_v29 = vsel %vm265_vm9, %v353_v8, 0.0  ;;  %v299_v34 = vsel %vm267_vm10, %v283_v3, 0.0 }
 0x15a   :  { %v471_v25 = vpop.f32.mrb[6].mxu1  ;;  %v198_v30 = vadd.f32 %v197_v4, %v183_v11  ;;  %v282_v12 = vmul.f32 %v231_v19, %v231_v19  ;;  %v438_v31 = vadd.f32 -1.0, %v231_v19  ;;  %v371_v35 = vsel %vm267_vm10, %v355_v7, 0.0 }
 0x15b   :  { %v161_v32 = vpop.f32.mrb[7].mxu1  ;;  %v312_v36 = vadd.f32 %v311_v14, %v297_v10  ;;  %v383_v37 = vadd.f32 %v382_v22, %v368_v1  ;;  %v186_v39 = vmul.f32 %v158_v21, %v158_v21  ;;  %v356_v43 = vmul.f32 %v440_v24, %v440_v24 }
 0x15c   :  { %v199_v15 = vadd.f32 %v198_v30, %v184_v63  ;;  %v298_v26 = vsel %vm266_vm11, %v282_v12, 0.0  ;;  %v354_v38 = vmul.f32 %v438_v31, %v438_v31  ;;  %v236_v46 = vmul.f32 0.0625, %v470_v9 }
 0x15d   :  { %v384_v42 = vadd.f32 %v383_v37, %v369_v29  ;;  %v313_v44 = vadd.f32 %v312_v36, %v298_v26  ;;  %v300_v47 = vsel %vm268_vm12, %v284_v20, 0.0  ;;  %v234_v49 = vmul.f32 0.0625, %v158_v21 }
 0x15e   :  { %v370_v23 = vsel %vm266_vm11, %v354_v38, 0.0  ;;  %v200_v48 = vadd.f32 %v199_v15, %v185_v16  ;;  %v188_v52 = vmul.f32 %v470_v9, %v470_v9  ;;  %v237_v18 = vmul.f32 0.0625, %v471_v25 }
 0x15f   :  { %v314_v50 = vadd.f32 %v313_v44, %v299_v34  ;;  %v385_v51 = vadd.f32 %v384_v42, %v370_v23  ;;  %v285_v54 = vmul.f32 %v234_v49, %v234_v49  ;;  %v441_v55 = vadd.f32 -1.0, %v234_v49 }
 0x160   :  { %v201_v53 = vadd.f32 %v200_v48, %v186_v39  ;;  %v187_v56 = vmul.f32 %v161_v32, %v161_v32  ;;  %v372_v57 = vsel %vm268_vm12, %v356_v43, 0.0  ;;  %v443_v59 = vadd.f32 -1.0, %v236_v46 }
 0x161   :  { %v386_v58 = vadd.f32 %v385_v51, %v371_v35  ;;  %v235_v60 = vmul.f32 0.0625, %v161_v32  ;;  %v287_v61 = vmul.f32 %v236_v46, %v236_v46  ;;  %v357_v28 = vmul.f32 %v441_v55, %v441_v55 }
 0x162   :  { %v444_v62 = vadd.f32 -1.0, %v237_v18  ;;  %v202_v63 = vadd.f32 %v201_v53, %v187_v56  ;;  %v301_v0 = vsel %vm269_vm13, %v285_v54, 0.0  ;;  %v189_v27 = vmul.f32 %v471_v25, %v471_v25 }
 0x163   :  { %v387_v17 = vadd.f32 %v386_v58, %v372_v57  ;;  %v286_v1 = vmul.f32 %v235_v60, %v235_v60  ;;  %v442_v2 = vadd.f32 -1.0, %v235_v60  ;;  %v373_v3 = vsel %vm269_vm13, %v357_v28, 0.0 }
 0x164   :  { %v203_v4 = vadd.f32 %v202_v63, %v188_v52  ;;  %v315_v5 = vadd.f32 %v314_v50, %v300_v47  ;;  %v359_v6 = vmul.f32 %v443_v59, %v443_v59  ;;  %v360_v11 = vmul.f32 %v444_v62, %v444_v62 }
 0x165   :  { %v388_v7 = vadd.f32 %v387_v17, %v373_v3  ;;  %v302_v8 = vsel %vm270_vm14, %v286_v1, 0.0  ;;  %v358_v9 = vmul.f32 %v442_v2, %v442_v2  ;;  %v288_v19 = vmul.f32 %v237_v18, %v237_v18 }
 0x166   :  { %v204_v10 = vadd.f32 %v203_v4, %v189_v27  ;;  %v316_v16 = vadd.f32 %v315_v5, %v301_v0  ;;  %v303_v14 = vsel %vm271_vm15, %v287_v61, 0.0  ;;  %v375_v20 = vsel %vm271_vm15, %v359_v6, 0.0 }
 0x167   :  { %v374_v33 = vsel %vm270_vm14, %v358_v9, 0.0  ;;  %v304_v29 = vsel %vm272_vm0, %v288_v19, 0.0  ;;  %v376_v30 = vsel %vm272_vm0, %v360_v11, 0.0 }
 0x168   :  { %205 = vadd.xlane.f32.xlu0 %v204_v10  ;;  %v317_v21 = vadd.f32 %v316_v16, %v302_v8  ;;  %v389_v22 = vadd.f32 %v388_v7, %v374_v33 }
 0x16a   :  { %v318_v24 = vadd.f32 %v317_v21, %v303_v14  ;;  %v390_v25 = vadd.f32 %v389_v22, %v375_v20 }
 0x16c   :  { %v319_v40 = vadd.f32 %v318_v24, %v304_v29  ;;  %v391_v12 = vadd.f32 %v390_v25, %v376_v30 }
 0x16e   :  { %320 = vadd.xlane.f32.xlu1 %v319_v40 }
 0x172   :  { %392 = vadd.xlane.f32.xlu1 %v391_v12 }
 0x1f5   :  { %v206_v31 = vpop.xlane.xlu0 %205 }
 0x1f6   :  { %v207_v45 = vrot.slane %v206_v31, 4 }
 0x1f8   :  { %v208_v32 = vadd.f32 %v207_v45, %v206_v31 }
 0x1fa   :  { %v209_v34 = vrot.slane %v208_v32, 2 }
 0x1fb   :  { %v321_v35 = vpop.xlane.xlu1 %320 }
 0x1fc   :  { %v322_v36 = vrot.slane %v321_v35, 4  ;;  %v210_v37 = vadd.f32 %v209_v34, %v208_v32 }
 0x1fe   :  { %v323_v13 = vadd.f32 %v322_v36, %v321_v35  ;;  %v211_v41 = vrot.slane %v210_v37, 1 }
 0x1ff   :  { %v393_v15 = vpop.xlane.xlu1 %392 }
 0x200   :  { %v324_v26 = vrot.slane %v323_v13, 2  ;;  %v394_v38 = vrot.slane %v393_v15, 4  ;;  %v212_v39 = vadd.f32 %v211_v41, %v210_v37 }
 0x202   :  { %v395_v42 = vadd.f32 %v394_v38, %v393_v15  ;;  %474 = vpush %v212_v39  ;;  %v325_v43 = vadd.f32 %v324_v26, %v323_v13 }
 0x204   :  { %v396_v44 = vrot.slane %v395_v42, 2  ;;  %v326_v46 = vrot.slane %v325_v43, 1 }
 0x206   :  { %v397_v47 = vadd.f32 %v396_v44, %v395_v42  ;;  %v327_v23 = vadd.f32 %v326_v46, %v325_v43 }
 0x208   :  { %476 = vpush %v327_v23  ;;  %v398_v48 = vrot.slane %v397_v47, 1 }
 0x20a   :  { %v399_v49 = vadd.f32 %v398_v48, %v397_v47 }
 0x20c   :  { %478 = vpush %v399_v49 }
 0x233   :  { %s475_s0 = spop %474 }
 0x234   :  { %s214_s1 = smul.f32 1.9921876e-05, %s475_s0 }
 0x239   :  { %s477_s13 = spop %476 }
 0x23a   :  { %s402_s14 = smul.f32 0.0051, %s477_s13 }
 0x23d   :  { %s479_s15 = spop %478 }
 0x23e   :  { %s403_s16 = ssub.f32 %s479_s15, %s402_s14 }
 0x240   :  { %s404_s17 = sadd.f32 %s403_s16, %s214_s1 }
 0x242   :  { %405 = sst [smem:[#allocation2]] %s404_s17 }
 0x243   :  { %494 = shalt.err (!%p491_p2)
}
 0x244   :  { %s497_s25 = smov [#allocation2]  }
 0x245   :  { %413 = dma.smem_to_hbm %s497_s25, 16, %s701_s2, [#allocation3]  }
 0x246   :  { %495 = dma.done.wait [#allocation3], 16  }
 0x247   :  { %496 = vsyncadd [#allocation3], 4294967280 }
 0x248   :  { %417 = sfence }
 0x249   :  { %418 = vsyncpa [#allocation3], 1 }

</bundles_post_ra>
